<compile_context>
chip_gen: v6e
topology: v6e:2x2x1
jax: 0.10.0
libtpu: 0.0.40
codegen_flags: <defaults>
</compile_context>

<pallas_src>
import jax
import jax.numpy as jnp
from jax import lax
from jax.experimental import pallas as pl
from jax.experimental.pallas import tpu as pltpu


# ---------------------------------------------------------------------------
# Prologue kernel: Wh = h @ W^T + b  (stored in compute dtype)
#                  invn = 1 / max(||Wh||, 1e-8)  (f32, per row)
# ---------------------------------------------------------------------------
def _linear_norm_kernel(h_ref, w_ref, b_ref, wh_ref, invn_ref):
    wh = jnp.dot(h_ref[...], w_ref[...], preferred_element_type=jnp.float32) + b_ref[...]
    # torch.cosine_similarity eps semantics: 1 / max(||x||, 1e-8)
    invn_ref[...] = lax.rsqrt(jnp.maximum(jnp.sum(wh * wh, axis=-1, keepdims=True), 1e-16))
    wh_ref[...] = wh.astype(wh_ref.dtype)


def _linear_norm(h, w_t, bias, *, tile, out_dtype):
    n, f_in = h.shape
    f_out = w_t.shape[1]
    return pl.pallas_call(
        _linear_norm_kernel,
        out_shape=(jax.ShapeDtypeStruct((n, f_out), out_dtype),
                   jax.ShapeDtypeStruct((n, 1), jnp.float32)),
        grid=(n // tile,),
        in_specs=[
            pl.BlockSpec((tile, f_in), lambda i: (i, 0)),
            pl.BlockSpec((f_in, f_out), lambda i: (0, 0)),
            pl.BlockSpec((1, f_out), lambda i: (0, 0)),
        ],
        out_specs=(pl.BlockSpec((tile, f_out), lambda i: (i, 0)),
                   pl.BlockSpec((tile, 1), lambda i: (i, 0))),
        compiler_params=pltpu.CompilerParams(dimension_semantics=("parallel",)),
    )(h, w_t, bias)


# ---------------------------------------------------------------------------
# Main attention kernel, tiled over (row-tile i, col-tile k); k is the reduction
# par = [s*c0, s*c1, s*c2, deg_coeff0, deg_coeff1]  in SMEM
# ---------------------------------------------------------------------------
def _attention_kernel(par_ref, wh_q_ref, invn_q_ref, wh_k_ref, invn_k_ref,
                      adj_ref, deg_ref, out_ref, acc_ref):
    k_idx = pl.program_id(1)
    cdt = wh_k_ref.dtype                      # compute dtype (bf16 or f32)
    tq, tk = adj_ref.shape

    wh_q = wh_q_ref[...]
    wh_k = wh_k_ref[...]

    @pl.when(k_idx == 0)
    def _init():
        # epilogue term folded into the accumulator init: acc = s*c2 * Wh_q
        acc_ref[...] = par_ref[2] * wh_q.astype(jnp.float32)

    # cosine similarity: reconstruct row-normalized Wh from Wh and 1/||Wh||,
    # then a plain bf16 MXU matmul with f32 accumulation.
    whn_q = (wh_q * invn_q_ref[...]).astype(cdt)
    whn_k = (wh_k * invn_k_ref[...]).astype(cdt)
    sim = lax.dot_general(whn_q, whn_k,
                          dimension_numbers=(((1,), (1,)), ((), ())),
                          preferred_element_type=jnp.float32)          # (tq, tk)

    # fused edge weights: adj_without_diag * softplus(dc0*deg + dc1)
    # iota-based diagonal mask -- no N^2 identity matrix is materialized.
    delta = (lax.broadcasted_iota(jnp.int32, (tq, tk), 0)
             - lax.broadcasted_iota(jnp.int32, (tq, tk), 1))
    diag_off = k_idx * tk - pl.program_id(0) * tq
    adj_t = jnp.where(delta != diag_off, adj_ref[...].astype(cdt), 0.0)

    x = par_ref[3] * deg_ref[...].astype(jnp.float32) + par_ref[4]
    # stable softplus; exp/log go to the EUP slot (free next to the VPU chain)
    sc = (jnp.maximum(x, 0.0) + jnp.log(1.0 + jnp.exp(-jnp.abs(x)))).astype(cdt)

    # sign gating fused into one weighting:
    #   s*c0*relu(sim) + s*c1*(-relu(-sim)) == sim * where(sim > 0, s*c0, s*c1)
    sim_c = sim.astype(cdt)
    gate = jnp.where(sim_c > 0, par_ref[0], par_ref[1]).astype(cdt)
    att = adj_t * sc * sim_c * gate                                    # (tq, tk) cdt

    acc_ref[...] += jnp.dot(att, wh_k, preferred_element_type=jnp.float32)

    @pl.when(k_idx == pl.num_programs(1) - 1)
    def _finalize():
        out_ref[...] = acc_ref[...].astype(out_ref.dtype)


# ---------------------------------------------------------------------------
# Wrapper (GGCNlayer_SP.forward, use_degree=use_sign=True)
# ---------------------------------------------------------------------------
def ggcn_layer_sp(h, w_t, bias, adj, deg, deg_coeff, coeff, scale,
                  *, tq=512, tk=1024, compute_dtype=jnp.bfloat16):
    """
    h:   (N, F_in) node features
    w_t: (F_in, F_out) = Linear.weight.T ;  bias: (1, F_out)
    adj, deg: dense (N, N) encodings of the sparse COO inputs (0 = no edge);
              may be stored in bf16 by the caller (graph-static) to halve the
              N^2 HBM stream of the main kernel.
    deg_coeff: (2,), coeff: (3,), scale: (1,)
    compute_dtype: operand dtype for both MXU matmuls and the gating chain.
    Note: with much larger tiles (e.g. tk=2048 plus big F_out), raise
    pltpu.CompilerParams(vmem_limit_bytes=...); the defaults here fit the
    32 MiB scoped default on every TPU generation (incl. v7x's 64 MiB VMEM).
    """
    n, _ = h.shape
    f_out = w_t.shape[1]
    tq = min(tq, n)
    tk = min(tk, n)
    assert n % tq == 0 and n % tk == 0, "N must be divisible by the tile sizes (pad inputs)"
    assert tq % 8 == 0 and (tk % 128 == 0 or tk == n), "tiles must respect the (8,128) layout"

    # scalar hoisting: softmax/softplus over 3+1 scalars, plus deg_coeff -> SMEM
    c = jax.nn.softmax(coeff)
    s = jax.nn.softplus(scale)[0]
    params = jnp.concatenate([(s * c).astype(jnp.float32),
                              deg_coeff.astype(jnp.float32)])          # (5,)

    # prologue: Wh = Linear(h) in compute dtype, plus per-row inverse norm (f32)
    wh, invn = _linear_norm(h, w_t, bias, tile=tq, out_dtype=compute_dtype)

    grid = (n // tq, n // tk)
    return pl.pallas_call(
        _attention_kernel,
        out_shape=jax.ShapeDtypeStruct((n, f_out), jnp.float32),
        grid=grid,
        in_specs=[
            pl.BlockSpec(memory_space=pltpu.MemorySpace.SMEM),     # params (5,) scalars
            pl.BlockSpec((tq, f_out), lambda i, k: (i, 0)),        # Wh   row tile (resident)
            pl.BlockSpec((tq, 1), lambda i, k: (i, 0)),            # 1/||Wh|| row tile
            pl.BlockSpec((tk, f_out), lambda i, k: (k, 0)),        # Wh   col tile (streamed)
            pl.BlockSpec((tk, 1), lambda i, k: (k, 0)),            # 1/||Wh|| col tile
            pl.BlockSpec((tq, tk), lambda i, k: (i, k)),           # adjacency tile
            pl.BlockSpec((tq, tk), lambda i, k: (i, k)),           # degree tile
        ],
        out_specs=pl.BlockSpec((tq, f_out), lambda i, k: (i, 0)),
        scratch_shapes=[pltpu.VMEM((tq, f_out), jnp.float32)],
        compiler_params=pltpu.CompilerParams(
            dimension_semantics=("parallel", "arbitrary")),
    )(params, wh, invn, wh, invn, adj, deg)


# ---------------------------------------------------------------------------
# Plain-JAX reference (faithful to the PyTorch forward, dense semantics)
# ---------------------------------------------------------------------------
def reference(h, w_t, bias, adj, deg, deg_coeff, coeff, scale):
    Wh = h @ w_t + bias
    norm = jnp.maximum(jnp.sqrt(jnp.sum(Wh * Wh, axis=-1, keepdims=True)), 1e-8)
    sim = (Wh @ Wh.T) / (norm * norm.T)
    sim_pos = jnp.maximum(sim, 0.0)
    sim_neg = jnp.minimum(sim, 0.0)
    n = adj.shape[0]
    adj_wo_diag = adj * (1.0 - jnp.eye(n, dtype=adj.dtype))
    sc = jax.nn.softplus(deg_coeff[0] * deg + deg_coeff[1])
    att_pos = adj_wo_diag * sc * sim_pos
    att_neg = adj_wo_diag * sc * sim_neg
    c = jax.nn.softmax(coeff)
    s = jax.nn.softplus(scale)[0]
    return s * (c[0] * (att_pos @ Wh) + c[1] * (att_neg @ Wh) + c[2] * Wh)


if __name__ == "__main__":
    import numpy as np

    N, F_IN, F_OUT = 256, 32, 32
    key = jax.random.PRNGKey(0)
    k_h, k_w, k_b, k_adj, k_deg = jax.random.split(key, 5)

    # node features
    h = jax.random.normal(k_h, (N, F_IN), dtype=jnp.float32)

    # nn.Linear parameters (synthetic deterministic init); weight passed as W^T
    w_t = 0.1 * jax.random.normal(k_w, (F_IN, F_OUT), dtype=jnp.float32)
    bias = 0.1 * jax.random.normal(k_b, (1, F_OUT), dtype=jnp.float32)

    # symmetric ~10%-dense adjacency with self-loops, dense-encoded (0 = no edge)
    probs = jax.random.uniform(k_adj, (N, N))
    mask = (probs < 0.1).astype(jnp.float32)
    mask = jnp.clip(mask + mask.T + jnp.eye(N, dtype=jnp.float32), 0.0, 1.0)
    adj = mask

    # degree_precompute: same sparsity pattern, positive per-edge values
    deg = mask * (2.0 * jax.random.uniform(k_deg, (N, N), dtype=jnp.float32))

    # module parameters (use_degree=True, use_sign=True, use_decay=True)
    deg_coeff = jnp.array([0.5, 0.0], dtype=jnp.float32)
    coeff = jnp.zeros((3,), dtype=jnp.float32)
    scale = 2.0 * jnp.ones((1,), dtype=jnp.float32)

    run = jax.jit(ggcn_layer_sp, static_argnames=("tq", "tk", "compute_dtype"))

    ref = np.asarray(jax.block_until_ready(
        reference(h, w_t, bias, adj, deg, deg_coeff, coeff, scale)))

    # exact-dtype path: f32 compute, multi-tile grid, tight tolerance
    out_f32 = jax.block_until_ready(
        run(h, w_t, bias, adj, deg, deg_coeff, coeff, scale,
            tq=128, tk=128, compute_dtype=jnp.float32))
    np.testing.assert_allclose(np.asarray(out_f32), ref, rtol=5e-4, atol=5e-4)

    # fast path: bf16 MXU operands + bf16 gating; graph-static adj/deg stored in
    # bf16 once and reused every call (halves the N^2 HBM stream).
    adj_bf16 = adj.astype(jnp.bfloat16)
    deg_bf16 = deg.astype(jnp.bfloat16)
    out_bf16 = jax.block_until_ready(
        run(h, w_t, bias, adj_bf16, deg_bf16, deg_coeff, coeff, scale,
            compute_dtype=jnp.bfloat16))
    np.testing.assert_allclose(np.asarray(out_bf16), ref, rtol=5e-2, atol=5e-2)

    print("KERNEL_OK")
</pallas_src>

<mosaic_0001>
module attributes {stable_mosaic.version = 11 : i64} {
  func.func @_linear_norm_kernel(%arg0: i32, %arg1: memref<128x32xf32, #tpu.memory_space<vmem>>, %arg2: memref<32x32xf32, #tpu.memory_space<vmem>>, %arg3: memref<1x32xf32, #tpu.memory_space<vmem>>, %arg4: memref<128x32xf32, #tpu.memory_space<vmem>>, %arg5: memref<128x1xf32, #tpu.memory_space<vmem>>) attributes {dimension_semantics = [#tpu.dimension_semantics<parallel>], iteration_bounds = array<i64: 2>, scalar_prefetch = 0 : i64, scratch_operands = 0 : i64, tpu.core_type = #tpu.core_type<tc>, window_params = [{transform_indices = @transform_0, window_bounds = array<i64: 128, 32>}, {pipeline_mode = #tpu.pipeline_mode<synchronous>, transform_indices = @transform_1, window_bounds = array<i64: 32, 32>}, {pipeline_mode = #tpu.pipeline_mode<synchronous>, transform_indices = @transform_2, window_bounds = array<i64: 1, 32>}, {transform_indices = @transform_3, window_bounds = array<i64: 128, 32>}, {transform_indices = @transform_4, window_bounds = array<i64: 128, 1>}]} {
    %c0 = arith.constant 0 : index
    %c0_0 = arith.constant 0 : index
    %0 = vector.load %arg1[%c0, %c0_0] : memref<128x32xf32, #tpu.memory_space<vmem>>, vector<128x32xf32>
    %c0_1 = arith.constant 0 : index
    %c0_2 = arith.constant 0 : index
    %1 = vector.load %arg2[%c0_1, %c0_2] : memref<32x32xf32, #tpu.memory_space<vmem>>, vector<32x32xf32>
    %cst = arith.constant dense<0.000000e+00> : vector<128x32xf32>
    %2 = tpu.matmul %0, %1, %cst {dimension_numbers = #tpu.dot_dimension_numbers<[1], [0], [0], [1], [0, 0, 1, 1], [], []>} : vector<128x32xf32>, vector<32x32xf32>, vector<128x32xf32> -> vector<128x32xf32>
    %c0_3 = arith.constant 0 : index
    %c0_4 = arith.constant 0 : index
    %3 = vector.load %arg3[%c0_3, %c0_4] : memref<1x32xf32, #tpu.memory_space<vmem>>, vector<1x32xf32>
    %4 = vector.broadcast %3 : vector<1x32xf32> to vector<128x32xf32>
    %5 = arith.addf %2, %4 : vector<128x32xf32>
    %6 = arith.mulf %5, %5 : vector<128x32xf32>
    %cst_5 = arith.constant dense<0.000000e+00> : vector<128xf32>
    %7 = vector.multi_reduction <add>, %6, %cst_5 [1] : vector<128x32xf32> to vector<128xf32>
    %8 = vector.shape_cast %7 : vector<128xf32> to vector<128x1xf32>
    %cst_6 = arith.constant 1.000000e-16 : f32
    %9 = vector.broadcast %cst_6 : f32 to vector<128x1xf32>
    %10 = arith.maximumf %8, %9 : vector<128x1xf32>
    %11 = math.rsqrt %10 : vector<128x1xf32>
    %c0_7 = arith.constant 0 : index
    %c0_8 = arith.constant 0 : index
    %12 = vector.load %arg5[%c0_7, %c0_8] : memref<128x1xf32, #tpu.memory_space<vmem>>, vector<128x1xf32>
    tpu.vector_store %arg5[%c0_7, %c0_8], %11 {strides = array<i32>} : memref<128x1xf32, #tpu.memory_space<vmem>>, vector<128x1xf32>,
    %c0_9 = arith.constant 0 : index
    %c0_10 = arith.constant 0 : index
    %13 = vector.load %arg4[%c0_9, %c0_10] : memref<128x32xf32, #tpu.memory_space<vmem>>, vector<128x32xf32>
    tpu.vector_store %arg4[%c0_9, %c0_10], %5 {strides = array<i32>} : memref<128x32xf32, #tpu.memory_space<vmem>>, vector<128x32xf32>,
    return
  }
  func.func @transform_0(%arg0: i32) -> (i32, i32) {
    %c0_i32 = arith.constant 0 : i32
    %c0_i32_0 = arith.constant 0 : i32
    return %arg0, %c0_i32 : i32, i32
  }
  func.func @transform_1(%arg0: i32) -> (i32, i32) {
    %c0_i32 = arith.constant 0 : i32
    %c0_i32_0 = arith.constant 0 : i32
    %c0_i32_1 = arith.constant 0 : i32
    return %c0_i32, %c0_i32_0 : i32, i32
  }
  func.func @transform_2(%arg0: i32) -> (i32, i32) {
    %c0_i32 = arith.constant 0 : i32
    %c0_i32_0 = arith.constant 0 : i32
    %c0_i32_1 = arith.constant 0 : i32
    return %c0_i32, %c0_i32_0 : i32, i32
  }
  func.func @transform_3(%arg0: i32) -> (i32, i32) {
    %c0_i32 = arith.constant 0 : i32
    %c0_i32_0 = arith.constant 0 : i32
    return %arg0, %c0_i32 : i32, i32
  }
  func.func @transform_4(%arg0: i32) -> (i32, i32) {
    %c0_i32 = arith.constant 0 : i32
    %c0_i32_0 = arith.constant 0 : i32
    return %arg0, %c0_i32 : i32, i32
  }
}

module attributes {stable_mosaic.version = 11 : i64} {
  func.func @_attention_kernel(%arg0: i32, %arg1: i32, %arg2: memref<5xf32, #tpu.memory_space<smem>>, %arg3: memref<128x32xf32, #tpu.memory_space<vmem>>, %arg4: memref<128x1xf32, #tpu.memory_space<vmem>>, %arg5: memref<128x32xf32, #tpu.memory_space<vmem>>, %arg6: memref<128x1xf32, #tpu.memory_space<vmem>>, %arg7: memref<128x128xf32, #tpu.memory_space<vmem>>, %arg8: memref<128x128xf32, #tpu.memory_space<vmem>>, %arg9: memref<128x32xf32, #tpu.memory_space<vmem>>, %arg10: memref<128x32xf32, #tpu.memory_space<vmem>>) attributes {dimension_semantics = [#tpu.dimension_semantics<parallel>, #tpu.dimension_semantics<arbitrary>], iteration_bounds = array<i64: 2, 2>, scalar_prefetch = 0 : i64, scratch_operands = 1 : i64, tpu.core_type = #tpu.core_type<tc>, window_params = [{transform_indices = @transform_0, window_bounds = array<i64: 5>}, {transform_indices = @transform_1, window_bounds = array<i64: 128, 32>}, {transform_indices = @transform_2, window_bounds = array<i64: 128, 1>}, {transform_indices = @transform_3, window_bounds = array<i64: 128, 32>}, {transform_indices = @transform_4, window_bounds = array<i64: 128, 1>}, {transform_indices = @transform_5, window_bounds = array<i64: 128, 128>}, {transform_indices = @transform_6, window_bounds = array<i64: 128, 128>}, {transform_indices = @transform_7, window_bounds = array<i64: 128, 32>}]} {
    %c0 = arith.constant 0 : index
    %c0_0 = arith.constant 0 : index
    %0 = vector.load %arg3[%c0, %c0_0] : memref<128x32xf32, #tpu.memory_space<vmem>>, vector<128x32xf32>
    %c0_1 = arith.constant 0 : index
    %c0_2 = arith.constant 0 : index
    %1 = vector.load %arg5[%c0_1, %c0_2] : memref<128x32xf32, #tpu.memory_space<vmem>>, vector<128x32xf32>
    %c0_i32 = arith.constant 0 : i32
    %2 = arith.cmpi eq, %arg1, %c0_i32 : i32
    %3 = arith.extui %2 : i1 to i32
    %c0_i32_3 = arith.constant 0 : i32
    %4 = arith.cmpi ne, %3, %c0_i32_3 : i32
    scf.if %4 {
      %c2 = arith.constant 2 : index
      %57 = memref.load %arg2[%c2] : memref<5xf32, #tpu.memory_space<smem>>
      %58 = vector.broadcast %57 : f32 to vector<128x32xf32>
      %59 = arith.mulf %58, %0 : vector<128x32xf32>
      %c0_25 = arith.constant 0 : index
      %c0_26 = arith.constant 0 : index
      %60 = vector.load %arg10[%c0_25, %c0_26] : memref<128x32xf32, #tpu.memory_space<vmem>>, vector<128x32xf32>
      tpu.vector_store %arg10[%c0_25, %c0_26], %59 {strides = array<i32>} : memref<128x32xf32, #tpu.memory_space<vmem>>, vector<128x32xf32>,
    } else {
    }
    %c0_4 = arith.constant 0 : index
    %c0_5 = arith.constant 0 : index
    %5 = vector.load %arg4[%c0_4, %c0_5] : memref<128x1xf32, #tpu.memory_space<vmem>>, vector<128x1xf32>
    %6 = vector.broadcast %5 : vector<128x1xf32> to vector<128x32xf32>
    %7 = arith.mulf %0, %6 : vector<128x32xf32>
    %c0_6 = arith.constant 0 : index
    %c0_7 = arith.constant 0 : index
    %8 = vector.load %arg6[%c0_6, %c0_7] : memref<128x1xf32, #tpu.memory_space<vmem>>, vector<128x1xf32>
    %9 = vector.broadcast %8 : vector<128x1xf32> to vector<128x32xf32>
    %10 = arith.mulf %1, %9 : vector<128x32xf32>
    %cst = arith.constant dense<0.000000e+00> : vector<128x128xf32>
    %11 = tpu.matmul %7, %10, %cst {dimension_numbers = #tpu.dot_dimension_numbers<[1], [1], [0], [0], [0, 0, 1, 0], [], []>} : vector<128x32xf32>, vector<128x32xf32>, vector<128x128xf32> -> vector<128x128xf32>
    %12 = tpu.iota {dimensions = array<i32: 0>} : vector<128x128xi32>
    %13 = tpu.iota {dimensions = array<i32: 1>} : vector<128x128xi32>
    %14 = arith.subi %12, %13 : vector<128x128xi32>
    %c128_i32 = arith.constant 128 : i32
    %15 = arith.muli %arg1, %c128_i32 : i32
    %c128_i32_8 = arith.constant 128 : i32
    %16 = arith.muli %arg0, %c128_i32_8 : i32
    %17 = arith.subi %15, %16 : i32
    %18 = vector.broadcast %17 : i32 to vector<128x128xi32>
    %19 = arith.cmpi ne, %14, %18 : vector<128x128xi32>
    %c0_9 = arith.constant 0 : index
    %c0_10 = arith.constant 0 : index
    %20 = vector.load %arg7[%c0_9, %c0_10] : memref<128x128xf32, #tpu.memory_space<vmem>>, vector<128x128xf32>
    %cst_11 = arith.constant 0.000000e+00 : f32
    %21 = vector.broadcast %cst_11 : f32 to vector<128x128xf32>
    %22 = arith.select %19, %20, %21 : vector<128x128xi1>, vector<128x128xf32>
    %c3 = arith.constant 3 : index
    %23 = memref.load %arg2[%c3] : memref<5xf32, #tpu.memory_space<smem>>
    %c0_12 = arith.constant 0 : index
    %c0_13 = arith.constant 0 : index
    %24 = vector.load %arg8[%c0_12, %c0_13] : memref<128x128xf32, #tpu.memory_space<vmem>>, vector<128x128xf32>
    %25 = vector.broadcast %23 : f32 to vector<128x128xf32>
    %26 = arith.mulf %25, %24 : vector<128x128xf32>
    %c4 = arith.constant 4 : index
    %27 = memref.load %arg2[%c4] : memref<5xf32, #tpu.memory_space<smem>>
    %28 = vector.broadcast %27 : f32 to vector<128x128xf32>
    %29 = arith.addf %26, %28 : vector<128x128xf32>
    %cst_14 = arith.constant 0.000000e+00 : f32
    %30 = vector.broadcast %cst_14 : f32 to vector<128x128xf32>
    %31 = arith.maximumf %29, %30 : vector<128x128xf32>
    %32 = math.absf %29 : vector<128x128xf32>
    %cst_15 = arith.constant 0.000000e+00 : f32
    %33 = vector.broadcast %cst_15 : f32 to vector<128x128xf32>
    %34 = arith.subf %33, %32 : vector<128x128xf32>
    %35 = math.exp %34 : vector<128x128xf32>
    %cst_16 = arith.constant 1.000000e+00 : f32
    %36 = vector.broadcast %cst_16 : f32 to vector<128x128xf32>
    %37 = arith.addf %36, %35 : vector<128x128xf32>
    %38 = math.log %37 : vector<128x128xf32>
    %39 = arith.addf %31, %38 : vector<128x128xf32>
    %cst_17 = arith.constant 0.000000e+00 : f32
    %40 = vector.broadcast %cst_17 : f32 to vector<128x128xf32>
    %41 = arith.cmpf ogt, %11, %40 : vector<128x128xf32>
    %c0_18 = arith.constant 0 : index
    %42 = memref.load %arg2[%c0_18] : memref<5xf32, #tpu.memory_space<smem>>
    %c1 = arith.constant 1 : index
    %43 = memref.load %arg2[%c1] : memref<5xf32, #tpu.memory_space<smem>>
    %44 = vector.broadcast %42 : f32 to vector<128x128xf32>
    %45 = vector.broadcast %43 : f32 to vector<128x128xf32>
    %46 = arith.select %41, %44, %45 : vector<128x128xi1>, vector<128x128xf32>
    %47 = arith.mulf %22, %39 : vector<128x128xf32>
    %48 = arith.mulf %47, %11 : vector<128x128xf32>
    %49 = arith.mulf %48, %46 : vector<128x128xf32>
    %c0_19 = arith.constant 0 : index
    %c0_20 = arith.constant 0 : index
    %50 = vector.load %arg10[%c0_19, %c0_20] : memref<128x32xf32, #tpu.memory_space<vmem>>, vector<128x32xf32>
    %cst_21 = arith.constant dense<0.000000e+00> : vector<128x32xf32>
    %51 = tpu.matmul %49, %1, %cst_21 {dimension_numbers = #tpu.dot_dimension_numbers<[1], [0], [0], [1], [0, 0, 1, 1], [], []>} : vector<128x128xf32>, vector<128x32xf32>, vector<128x32xf32> -> vector<128x32xf32>
    %52 = arith.addf %50, %51 : vector<128x32xf32>
    %c0_22 = arith.constant 0 : index
    %c0_23 = arith.constant 0 : index
    %53 = vector.load %arg10[%c0_22, %c0_23] : memref<128x32xf32, #tpu.memory_space<vmem>>, vector<128x32xf32>
    tpu.vector_store %arg10[%c0_22, %c0_23], %52 {strides = array<i32>} : memref<128x32xf32, #tpu.memory_space<vmem>>, vector<128x32xf32>,
    %c1_i32 = arith.constant 1 : i32
    %54 = arith.cmpi eq, %arg1, %c1_i32 : i32
    %55 = arith.extui %54 : i1 to i32
    %c0_i32_24 = arith.constant 0 : i32
    %56 = arith.cmpi ne, %55, %c0_i32_24 : i32
    scf.if %56 {
      %c0_25 = arith.constant 0 : index
      %c0_26 = arith.constant 0 : index
      %57 = vector.load %arg10[%c0_25, %c0_26] : memref<128x32xf32, #tpu.memory_space<vmem>>, vector<128x32xf32>
      %c0_27 = arith.constant 0 : index
      %c0_28 = arith.constant 0 : index
      %58 = vector.load %arg9[%c0_27, %c0_28] : memref<128x32xf32, #tpu.memory_space<vmem>>, vector<128x32xf32>
      tpu.vector_store %arg9[%c0_27, %c0_28], %57 {strides = array<i32>} : memref<128x32xf32, #tpu.memory_space<vmem>>, vector<128x32xf32>,
    } else {
    }
    return
  }
  func.func @transform_0(%arg0: i32, %arg1: i32) -> i32 {
    %c0_i32 = arith.constant 0 : i32
    %c0_i32_0 = arith.constant 0 : i32
    return %c0_i32 : i32
  }
  func.func @transform_1(%arg0: i32, %arg1: i32) -> (i32, i32) {
    %c0_i32 = arith.constant 0 : i32
    %c0_i32_0 = arith.constant 0 : i32
    return %arg0, %c0_i32 : i32, i32
  }
  func.func @transform_2(%arg0: i32, %arg1: i32) -> (i32, i32) {
    %c0_i32 = arith.constant 0 : i32
    %c0_i32_0 = arith.constant 0 : i32
    return %arg0, %c0_i32 : i32, i32
  }
  func.func @transform_3(%arg0: i32, %arg1: i32) -> (i32, i32) {
    %c0_i32 = arith.constant 0 : i32
    %c0_i32_0 = arith.constant 0 : i32
    return %arg1, %c0_i32 : i32, i32
  }
  func.func @transform_4(%arg0: i32, %arg1: i32) -> (i32, i32) {
    %c0_i32 = arith.constant 0 : i32
    %c0_i32_0 = arith.constant 0 : i32
    return %arg1, %c0_i32 : i32, i32
  }
  func.func @transform_5(%arg0: i32, %arg1: i32) -> (i32, i32) {
    %c0_i32 = arith.constant 0 : i32
    return %arg0, %arg1 : i32, i32
  }
  func.func @transform_6(%arg0: i32, %arg1: i32) -> (i32, i32) {
    %c0_i32 = arith.constant 0 : i32
    return %arg0, %arg1 : i32, i32
  }
  func.func @transform_7(%arg0: i32, %arg1: i32) -> (i32, i32) {
    %c0_i32 = arith.constant 0 : i32
    %c0_i32_0 = arith.constant 0 : i32
    return %arg0, %c0_i32 : i32, i32
  }
}

</mosaic_0001>

<bundles_post_ra>
// kernel: ggcn_layer_sp.2
= control target key start
LH: loop header
LB: loop body
LE: loop exit
PB: predicated region body
PF: predicated region fallthrough
CT: control target
= control target key end

     0   :  { %10 = vsyncpa [#allocation3], 0  ;;  %s1168_s0 = inlined_call_operand.vmem [shape: f32[256,32], index: 0, kind: input, shape index: {}]   ;;  %s1169_s1 = inlined_call_operand.hbm [shape: f32[32,32], index: 1, kind: input, shape index: {}]   ;;  %s1170_s2 = inlined_call_operand.hbm [shape: f32[1,32], index: 2, kind: input, shape index: {}]   ;;  %s1171_s3 = inlined_call_operand.vmem [shape: f32[256,32], index: 3, kind: output, shape index: {0}]   ;;  %s1172_s4 = inlined_call_operand.vmem [shape: f32[256,1], index: 4, kind: output, shape index: {1}]  }
   0x1   :  { %11 = vsyncpa [#allocation5], 0  ;;  %s959_s15 = smov 0  }
   0x2 LB: > { %s705_s16 = sadd.s32 4294967295, %s928_s15   ;;  %p707_p0 = scmp.ge.s32.totalorder %s928_s15, 1  ;;  %s928_s15 = sphi %s959_s15, %s17_s15  }
   0x3   : > { %p142_p1 = scmp.lt.s32.totalorder %s928_s15, 3  ;;  %s930_s17 = smov [#allocation2]  }
   0x4   : > { %s154_s18 = sshll.u32 %s930_s17, 4  ;;  %p973_p3 = scmp.eq.s32.totalorder %s705_s16, 0  ;;  %s155_s18 = int_to_ptr.vmem [resolvable:$true] %s154_s18 }
   0x5   : > { %p967_p2 = pnand %p707_p0, %p142_p1  ;;  %s931_s21 = smov [#allocation4]  }
   0x6   : > { %s168_s22 = sshll.u32 %s931_s21, 4  ;;  %s873_s24 = scalar_lea.vmem %s155_s18, 512  ;;  %s169_s22 = int_to_ptr.vmem [resolvable:$true] %s168_s22 }
   0x7   : > { %p807_p4 = pneg %p967_p2  ;;  %p874_p7 = scmp.ne.s32.totalorder %s155_s18, %s873_s24 }
   0x8   : > { %p881_p10 = scmp.lt.s32.totalorder %s155_s18, %s155_s18  ;;  %p882_p11 = scmp.lt.s32.totalorder %s873_s24, %s873_s24 }
   0x9   : > { %p981_p5 = pnand %p973_p3, %p807_p4 }
   0xa   : > { %p883_p12 = por %p882_p11, %p881_p10 }
   0xb   : > { %p864_p6 = pneg %p981_p5 }
   0xd   : > { %p876_p8 = pnand %p874_p7, %p864_p6 }
   0xf   : > { %p877_p9 = pneg %p876_p8 }
  0x11   : > { %p884_p13 = pnand %p883_p12, %p877_p9 }
  0x13   : > { %887 = shalt.err (!%p884_p13)
}
  0x14   : > { %s932_s25 = smov 128   ;;  %s933_s26 = smov 8  }
  0x15   : > { %810 = dma.hbm_to_vmem [thread:$0]  (!%p981_p5), %s1169_s1, 512, %s155_s18, [#allocation3], %s932_s25, %s932_s25, %s933_s26  }
  0x16   : > { %s899_s29 = scalar_lea.vmem %s169_s22, 16  ;;  %s906_s30 = scalar_lea.vmem %s169_s22, 32 }
  0x17   : > { %p900_p0 = scmp.ne.s32.totalorder %s169_s22, %s899_s29  ;;  %p907_p7 = scmp.lt.s32.totalorder %s169_s22, %s169_s22 }
  0x18   : > { %p908_p8 = scmp.lt.s32.totalorder %s906_s30, %s899_s29 }
  0x19   : > { %p902_p1 = pnand %p900_p0, %p864_p6 }
  0x1a   : > { %p909_p9 = por %p908_p8, %p907_p7 }
  0x1b   : > { %p903_p4 = pneg %p902_p1 }
  0x1d   : > { %p910_p10 = pnand %p909_p9, %p903_p4 }
  0x1f   : > { %913 = shalt.err (!%p910_p10)
}
  0x20   : > { %813 = dma.hbm_to_vmem [thread:$0]  (!%p981_p5), %s1170_s2, 16, %s169_s22, [#allocation5]  }
  0x21   : > { %190 = sbr.rel (%p967_p2) target bundleno = 433 (0x1b1), region = 32 }
  0x26   : > { %919 = dma.done.wait (%p973_p3), [#allocation3], 512  }
  0x27   : > { %921 = vsyncadd (%p973_p3), [#allocation3], 4294966784 }
  0x28   : > { %923 = dma.done.wait (%p973_p3), [#allocation5], 16  }
  0x29   : > { %925 = vsyncadd (%p973_p3), [#allocation5], 4294967280  ;;  %s714_s7 = sshll.u32 %s705_s16, 4  ;;  %v262_v0 = vld [vmem:[#allocation2 + $0x18] sm:$0xff]  ;;  %v261_v1 = vld [vmem:[#allocation2 + $0x10] sm:$0xff]  ;;  %vm270_vm0 = vcmask 261120  }
  0x2a   : > { %p226_p6 = scmp.lt.s32.totalorder %s714_s7, 31  ;;  %759 = vmatprep.subr.mxu0 %v262_v0  ;;  %791 = vmatprep.subr.mxu1 %v262_v0  ;;  %v260_v2 = vld [vmem:[#allocation2 + $0x8] sm:$0xff]  ;;  %v259_v3 = vld [vmem:[#allocation2] sm:$0xff]  ;;  %vm560_vm1 = vcmask 7168  }
  0x2b   : > { %760 = vmatpush3.msra.mxu0 %v262_v0  ;;  %795 = vmatpush3.msra.mxu1 %v262_v0  ;;  %v1055_v20 = vld [vmem:[#allocation4] ss:$0 sm:$0xff] }
  0x2c   : > { %s1177_s7 = smov (!%p226_p6, %s714_s7), 31  ;;  %761 = vmatprep.subr.mxu0 %v261_v1  ;;  %792 = vmatprep.subr.mxu1 %v261_v1 }
  0x2d   : > { %s1015_s8 = sshll.u32 %s1177_s7, 3  ;;  %762 = vmatpush3.msra.mxu0 %v261_v1  ;;  %796 = vmatpush3.msra.mxu1 %v261_v1 }
  0x2e   : > { %s1021_s11 = scalar_lea.vmem %s1168_s0, %s1015_s8  ;;  %763 = vmatprep.subr.mxu0 %v260_v2  ;;  %793 = vmatprep.subr.mxu1 %v260_v2  ;;  %s1061_s14 = scalar_lea.vmem %s1171_s3, %s1015_s8 }
  0x2f   : > { %764 = vmatpush3.msra.mxu0 %v260_v2  ;;  %797 = vmatpush3.msra.mxu1 %v260_v2  ;;  %v243_v4 = vld [vmem:[%s1021_s11] sm:$0xff]  ;;  %v244_v6 = vld [vmem:[%s1021_s11 + $0x8] sm:$0xff]  ;;  %v245_v8 = vld [vmem:[%s1021_s11 + $0x10] sm:$0xff]  ;;  %s1131_s18 = scalar_lea.vmem %s1172_s4, %s1015_s8 }
  0x30   : > { %v251_v5 = vld [vmem:[%s1021_s11 + $0x40] sm:$0xff]  ;;  %765 = vmatprep.subr.mxu0 %v259_v3  ;;  %794 = vmatprep.subr.mxu1 %v259_v3  ;;  %v252_v7 = vld [vmem:[%s1021_s11 + $0x48] sm:$0xff]  ;;  %v253_v9 = vld [vmem:[%s1021_s11 + $0x50] sm:$0xff] }
  0x31   : > { %766 = vmatpush3.msra.mxu0 %v259_v3  ;;  %798 = vmatpush3.msra.mxu1 %v259_v3  ;;  %v246_v10 = vld [vmem:[%s1021_s11 + $0x18] sm:$0xff]  ;;  %v247_v12 = vld [vmem:[%s1021_s11 + $0x20] sm:$0xff]  ;;  %v248_v14 = vld [vmem:[%s1021_s11 + $0x28] sm:$0xff] }
  0x32   : > { %767 = vmatprep.mubr.msk.f32.mxu0 %vm270_vm0, %v243_v4  ;;  %779 = vmatprep.mubr.msk.f32.mxu1 %vm270_vm0, %v251_v5  ;;  %v254_v11 = vld [vmem:[%s1021_s11 + $0x58] sm:$0xff]  ;;  %v255_v13 = vld [vmem:[%s1021_s11 + $0x60] sm:$0xff]  ;;  %v256_v15 = vld [vmem:[%s1021_s11 + $0x68] sm:$0xff] }
  0x33   : > { %768 = vmatmul.mubr.msk.f32.vlgmr.msra.gmra.mxu0 %vm270_vm0, %v244_v6  ;;  %780 = vmatmul.mubr.msk.f32.vlgmr.msra.gmra.mxu1 %vm270_vm0, %v252_v7  ;;  %v249_v16 = vld [vmem:[%s1021_s11 + $0x30] sm:$0xff]  ;;  %v250_v18 = vld [vmem:[%s1021_s11 + $0x38] sm:$0xff] }
  0x34   : > { %770 = vmatprep.mubr.msk.f32.mxu0 %vm270_vm0, %v245_v8  ;;  %782 = vmatprep.mubr.msk.f32.mxu1 %vm270_vm0, %v253_v9  ;;  %v257_v17 = vld [vmem:[%s1021_s11 + $0x70] sm:$0xff]  ;;  %v258_v19 = vld [vmem:[%s1021_s11 + $0x78] sm:$0xff] }
  0x37   : > { %771 = vmatmul.mubr.msk.f32.gmra.mxu0 %vm270_vm0, %v246_v10  ;;  %783 = vmatmul.mubr.msk.f32.gmra.mxu1 %vm270_vm0, %v254_v11 }
  0x38   : > { %773 = vmatprep.mubr.msk.f32.mxu0 %vm270_vm0, %v247_v12  ;;  %785 = vmatprep.mubr.msk.f32.mxu1 %vm270_vm0, %v255_v13 }
  0x3b   : > { %774 = vmatmul.mubr.msk.f32.gmra.mxu0 %vm270_vm0, %v248_v14  ;;  %786 = vmatmul.mubr.msk.f32.gmra.mxu1 %vm270_vm0, %v256_v15 }
  0x3c   : > { %776 = vmatprep.mubr.msk.f32.mxu0 %vm270_vm0, %v249_v16  ;;  %788 = vmatprep.mubr.msk.f32.mxu1 %vm270_vm0, %v257_v17 }
  0x3f   : > { %777 = vmatmul.mubr.msk.f32.gmra.mxu0 %vm270_vm0, %v250_v18  ;;  %789 = vmatmul.mubr.msk.f32.gmra.mxu1 %vm270_vm0, %v258_v19 }
  0xf3   : > { %v769_v21 = vpop.f32.mrf.mxu0  ;;  %v781_v22 = vpop.f32.mrf.mxu1 }
  0xf4   : > { %v391_v23 = vadd.f32 %v769_v21, %v1055_v20  ;;  %v431_v24 = vadd.f32 %v781_v22, %v1055_v20 }
  0xf5   : > { %v385_v25 = vpop.f32.mrf.mxu0  ;;  %v425_v26 = vpop.f32.mrf.mxu1 }
  0xf6   : > { %578 = vst.msk [vmem:[%s1061_s14 + $0x8] sm:$0xff] %vm270_vm0, %v391_v23  ;;  %586 = vst.msk [vmem:[%s1061_s14 + $0x48] sm:$0xff] %vm270_vm0, %v431_v24  ;;  %v386_v27 = vadd.f32 %v1055_v20, %v385_v25  ;;  %v426_v28 = vadd.f32 %v1055_v20, %v425_v26  ;;  %v473_v29 = vmul.f32 %v431_v24, %v431_v24 }
  0xf7   : > { %v465_v30 = vmul.f32 %v391_v23, %v391_v23  ;;  %v772_v31 = vpop.f32.mrf.mxu0  ;;  %v784_v32 = vpop.f32.mrf.mxu1 }
  0xf8   : > { %577 = vst.msk [vmem:[%s1061_s14] sm:$0xff] %vm270_vm0, %v386_v27  ;;  %585 = vst.msk [vmem:[%s1061_s14 + $0x40] sm:$0xff] %vm270_vm0, %v426_v28  ;;  %v401_v33 = vadd.f32 %v772_v31, %v1055_v20  ;;  %v507_v34 = vsel %vm270_vm0, %v473_v29, 0.0  ;;  %v441_v35 = vadd.f32 %v784_v32, %v1055_v20  ;;  %v464_v39 = vmul.f32 %v386_v27, %v386_v27 }
  0xf9   : > { %v483_v36 = vsel %vm270_vm0, %v465_v30, 0.0  ;;  %508 = vadd.xlane.f32.xlu1 %v507_v34  ;;  %v395_v37 = vpop.f32.mrf.mxu0  ;;  %v435_v38 = vpop.f32.mrf.mxu1  ;;  %v472_v45 = vmul.f32 %v426_v28, %v426_v28 }
  0xfa   : > { %484 = vadd.xlane.f32.xlu0 %v483_v36  ;;  %580 = vst.msk [vmem:[%s1061_s14 + $0x18] sm:$0xff] %vm270_vm0, %v401_v33  ;;  %588 = vst.msk [vmem:[%s1061_s14 + $0x58] sm:$0xff] %vm270_vm0, %v441_v35  ;;  %v396_v40 = vadd.f32 %v1055_v20, %v395_v37  ;;  %v436_v41 = vadd.f32 %v1055_v20, %v435_v38  ;;  %v467_v42 = vmul.f32 %v401_v33, %v401_v33 }
  0xfb   : > { %v475_v43 = vmul.f32 %v441_v35, %v441_v35  ;;  %v775_v44 = vpop.f32.mrf.mxu0  ;;  %v787_v46 = vpop.f32.mrf.mxu1  ;;  %v480_v48 = vsel %vm270_vm0, %v464_v39, 0.0  ;;  %v504_v56 = vsel %vm270_vm0, %v472_v45, 0.0 }
  0xfc   : > { %579 = vst.msk [vmem:[%s1061_s14 + $0x10] sm:$0xff] %vm270_vm0, %v396_v40  ;;  %587 = vst.msk [vmem:[%s1061_s14 + $0x50] sm:$0xff] %vm270_vm0, %v436_v41  ;;  %v489_v47 = vsel %vm270_vm0, %v467_v42, 0.0  ;;  %v411_v49 = vadd.f32 %v775_v44, %v1055_v20  ;;  %v451_v50 = vadd.f32 %v787_v46, %v1055_v20  ;;  %v466_v59 = vmul.f32 %v396_v40, %v396_v40 }
  0xfd   : > { %490 = vadd.xlane.f32.xlu1 %v489_v47  ;;  %v405_v51 = vpop.f32.mrf.mxu0  ;;  %v445_v52 = vpop.f32.mrf.mxu1  ;;  %v513_v53 = vsel %vm270_vm0, %v475_v43, 0.0  ;;  %v474_v60 = vmul.f32 %v436_v41, %v436_v41 }
  0xfe   : > { %481 = vadd.xlane.f32.xlu0 %v480_v48  ;;  %582 = vst.msk [vmem:[%s1061_s14 + $0x28] sm:$0xff] %vm270_vm0, %v411_v49  ;;  %v406_v54 = vadd.f32 %v1055_v20, %v405_v51  ;;  %590 = vst.msk [vmem:[%s1061_s14 + $0x68] sm:$0xff] %vm270_vm0, %v451_v50  ;;  %v446_v55 = vadd.f32 %v1055_v20, %v445_v52  ;;  %v486_v3 = vsel %vm270_vm0, %v466_v59, 0.0 }
  0xff   : > { %v778_v57 = vpop.f32.mrf.mxu0  ;;  %v790_v58 = vpop.f32.mrf.mxu1  ;;  %v510_v4 = vsel %vm270_vm0, %v474_v60, 0.0  ;;  %v469_v5 = vmul.f32 %v411_v49, %v411_v49  ;;  %v477_v9 = vmul.f32 %v451_v50, %v451_v50 }
 0x100   : > { %581 = vst.msk [vmem:[%s1061_s14 + $0x20] sm:$0xff] %vm270_vm0, %v406_v54  ;;  %589 = vst.msk [vmem:[%s1061_s14 + $0x60] sm:$0xff] %vm270_vm0, %v446_v55  ;;  %v421_v61 = vadd.f32 %v778_v57, %v1055_v20  ;;  %v461_v62 = vadd.f32 %v790_v58, %v1055_v20  ;;  %v468_v6 = vmul.f32 %v406_v54, %v406_v54 }
 0x101   : > { %514 = vadd.xlane.f32.xlu1 %v513_v53  ;;  %v415_v63 = vpop.f32.mrf.mxu0  ;;  %v455_v0 = vpop.f32.mrf.mxu1  ;;  %v495_v7 = vsel %vm270_vm0, %v469_v5, 0.0  ;;  %v476_v10 = vmul.f32 %v446_v55, %v446_v55  ;;  %v519_v11 = vsel %vm270_vm0, %v477_v9, 0.0 }
 0x102   : > { %505 = vadd.xlane.f32.xlu0 %v504_v56  ;;  %584 = vst.msk [vmem:[%s1061_s14 + $0x38] sm:$0xff] %vm270_vm0, %v421_v61  ;;  %v416_v1 = vadd.f32 %v1055_v20, %v415_v63  ;;  %592 = vst.msk [vmem:[%s1061_s14 + $0x78] sm:$0xff] %vm270_vm0, %v461_v62  ;;  %v456_v2 = vadd.f32 %v1055_v20, %v455_v0  ;;  %v492_v8 = vsel %vm270_vm0, %v468_v6, 0.0 }
 0x103   : > { %v516_v12 = vsel %vm270_vm0, %v476_v10, 0.0  ;;  %v471_v13 = vmul.f32 %v421_v61, %v421_v61  ;;  %v479_v17 = vmul.f32 %v461_v62, %v461_v62 }
 0x104   : > { %583 = vst.msk [vmem:[%s1061_s14 + $0x30] sm:$0xff] %vm270_vm0, %v416_v1  ;;  %591 = vst.msk [vmem:[%s1061_s14 + $0x70] sm:$0xff] %vm270_vm0, %v456_v2  ;;  %v470_v14 = vmul.f32 %v416_v1, %v416_v1  ;;  %v478_v18 = vmul.f32 %v456_v2, %v456_v2 }
 0x105   : > { %487 = vadd.xlane.f32.xlu1 %v486_v3  ;;  %v501_v15 = vsel %vm270_vm0, %v471_v13, 0.0  ;;  %v525_v19 = vsel %vm270_vm0, %v479_v17, 0.0 }
 0x106   : > { %511 = vadd.xlane.f32.xlu0 %v510_v4  ;;  %v498_v16 = vsel %vm270_vm0, %v470_v14, 0.0  ;;  %v522_v20 = vsel %vm270_vm0, %v478_v18, 0.0 }
 0x109   : > { %496 = vadd.xlane.f32.xlu1 %v495_v7 }
 0x10a   : > { %493 = vadd.xlane.f32.xlu0 %v492_v8 }
 0x10d   : > { %520 = vadd.xlane.f32.xlu1 %v519_v11 }
 0x10e   : > { %517 = vadd.xlane.f32.xlu0 %v516_v12 }
 0x111   : > { %502 = vadd.xlane.f32.xlu1 %v501_v15 }
 0x112   : > { %499 = vadd.xlane.f32.xlu0 %v498_v16 }
 0x115   : > { %526 = vadd.xlane.f32.xlu1 %v525_v19 }
 0x116   : > { %523 = vadd.xlane.f32.xlu0 %v522_v20 }
 0x182   : > { %v509_v21 = vpop.xlane.xlu1 %508 }
 0x183   : > { %v485_v22 = vpop.xlane.xlu0 %484  ;;  %v537_v23 = vmax.f32 %v509_v21, 1e-16 }
 0x184   : > { %v529_v24 = vmax.f32 %v485_v22, 1e-16 }
 0x185   : > { %830 = vrsqrt.f32 %v537_v23 }
 0x186   : > { %832 = vrsqrt.f32 %v529_v24  ;;  %v491_v25 = vpop.xlane.xlu1 %490 }
 0x187   : > { %v482_v26 = vpop.xlane.xlu0 %481  ;;  %v531_v27 = vmax.f32 %v491_v25, 1e-16 }
 0x188   : > { %v528_v28 = vmax.f32 %v482_v26, 1e-16 }
 0x189   : > { %834 = vrsqrt.f32 %v531_v27 }
 0x18a   : > { %836 = vrsqrt.f32 %v528_v28  ;;  %v515_v29 = vpop.xlane.xlu1 %514 }
 0x18b   : > { %v506_v30 = vpop.xlane.xlu0 %505  ;;  %v539_v31 = vmax.f32 %v515_v29, 1e-16 }
 0x18c   : > { %v536_v32 = vmax.f32 %v506_v30, 1e-16 }
 0x18d   : > { %838 = vrsqrt.f32 %v539_v31 }
 0x18e   : > { %840 = vrsqrt.f32 %v536_v32  ;;  %v488_v33 = vpop.xlane.xlu1 %487 }
 0x18f   : > { %v512_v34 = vpop.xlane.xlu0 %511  ;;  %v530_v35 = vmax.f32 %v488_v33, 1e-16 }
 0x190   : > { %v538_v36 = vmax.f32 %v512_v34, 1e-16 }
 0x191   : > { %842 = vrsqrt.f32 %v530_v35 }
 0x192   : > { %v831_v37 = vpop.eup %830  ;;  %844 = vrsqrt.f32 %v538_v36  ;;  %v497_v38 = vpop.xlane.xlu1 %496 }
 0x193   : > { %v494_v39 = vpop.xlane.xlu0 %493  ;;  %v833_v40 = vpop.eup %832  ;;  %570 = vst.msk [vmem:[%s1131_s18 + $0x48] sm:$0xff] %vm560_vm1, %v831_v37  ;;  %v533_v41 = vmax.f32 %v497_v38, 1e-16 }
 0x194   : > { %v532_v42 = vmax.f32 %v494_v39, 1e-16  ;;  %562 = vst.msk [vmem:[%s1131_s18 + $0x8] sm:$0xff] %vm560_vm1, %v833_v40 }
 0x195   : > { %846 = vrsqrt.f32 %v533_v41 }
 0x196   : > { %v835_v43 = vpop.eup %834  ;;  %848 = vrsqrt.f32 %v532_v42  ;;  %v521_v44 = vpop.xlane.xlu1 %520 }
 0x197   : > { %v518_v45 = vpop.xlane.xlu0 %517  ;;  %v837_v46 = vpop.eup %836  ;;  %564 = vst.msk [vmem:[%s1131_s18 + $0x18] sm:$0xff] %vm560_vm1, %v835_v43  ;;  %v541_v47 = vmax.f32 %v521_v44, 1e-16 }
 0x198   : > { %v540_v48 = vmax.f32 %v518_v45, 1e-16  ;;  %561 = vst.msk [vmem:[%s1131_s18] sm:$0xff] %vm560_vm1, %v837_v46 }
 0x199   : > { %850 = vrsqrt.f32 %v541_v47 }
 0x19a   : > { %v839_v49 = vpop.eup %838  ;;  %852 = vrsqrt.f32 %v540_v48  ;;  %v503_v50 = vpop.xlane.xlu1 %502 }
 0x19b   : > { %v500_v51 = vpop.xlane.xlu0 %499  ;;  %v841_v52 = vpop.eup %840  ;;  %572 = vst.msk [vmem:[%s1131_s18 + $0x58] sm:$0xff] %vm560_vm1, %v839_v49  ;;  %v535_v53 = vmax.f32 %v503_v50, 1e-16 }
 0x19c   : > { %v534_v54 = vmax.f32 %v500_v51, 1e-16  ;;  %569 = vst.msk [vmem:[%s1131_s18 + $0x40] sm:$0xff] %vm560_vm1, %v841_v52 }
 0x19d   : > { %854 = vrsqrt.f32 %v535_v53 }
 0x19e   : > { %v843_v55 = vpop.eup %842  ;;  %856 = vrsqrt.f32 %v534_v54  ;;  %v527_v56 = vpop.xlane.xlu1 %526 }
 0x19f   : > { %v524_v57 = vpop.xlane.xlu0 %523  ;;  %v845_v58 = vpop.eup %844  ;;  %563 = vst.msk [vmem:[%s1131_s18 + $0x10] sm:$0xff] %vm560_vm1, %v843_v55  ;;  %v543_v59 = vmax.f32 %v527_v56, 1e-16 }
 0x1a0   : > { %v542_v60 = vmax.f32 %v524_v57, 1e-16  ;;  %571 = vst.msk [vmem:[%s1131_s18 + $0x50] sm:$0xff] %vm560_vm1, %v845_v58 }
 0x1a1   : > { %858 = vrsqrt.f32 %v543_v59 }
 0x1a2   : > { %v847_v61 = vpop.eup %846  ;;  %860 = vrsqrt.f32 %v542_v60 }
 0x1a3   : > { %v849_v62 = vpop.eup %848  ;;  %566 = vst.msk [vmem:[%s1131_s18 + $0x28] sm:$0xff] %vm560_vm1, %v847_v61 }
 0x1a4   : > { %565 = vst.msk [vmem:[%s1131_s18 + $0x20] sm:$0xff] %vm560_vm1, %v849_v62 }
 0x1a6   : > { %v851_v63 = vpop.eup %850 }
 0x1a7   : > { %v853_v0 = vpop.eup %852  ;;  %574 = vst.msk [vmem:[%s1131_s18 + $0x68] sm:$0xff] %vm560_vm1, %v851_v63 }
 0x1a8   : > { %573 = vst.msk [vmem:[%s1131_s18 + $0x60] sm:$0xff] %vm560_vm1, %v853_v0 }
 0x1aa   : > { %v855_v1 = vpop.eup %854 }
 0x1ab   : > { %v857_v2 = vpop.eup %856  ;;  %568 = vst.msk [vmem:[%s1131_s18 + $0x38] sm:$0xff] %vm560_vm1, %v855_v1 }
 0x1ac   : > { %567 = vst.msk [vmem:[%s1131_s18 + $0x30] sm:$0xff] %vm560_vm1, %v857_v2 }
 0x1ae   : > { %v859_v3 = vpop.eup %858 }
 0x1af   : > { %v861_v4 = vpop.eup %860  ;;  %576 = vst.msk [vmem:[%s1131_s18 + $0x78] sm:$0xff] %vm560_vm1, %v859_v3 }
 0x1b0   : > { %575 = vst.msk [vmem:[%s1131_s18 + $0x70] sm:$0xff] %vm560_vm1, %v861_v4 }
 0x1b1 PF: > { %s17_s15 = sadd.s32 1, %s928_s15  }
 0x1b2   : > { %p14_p2 = scmp.ge.s32.totalorder %s17_s15, 4  }
 0x1b4   :  { %16 = sbr.rel (!%p14_p2) target bundleno = 2 (0x2), region = 83 }
 0x1b9   :  { %632 = vsyncpa [#allocation3], 1 }
 0x1ba   :  { %634 = vsyncpa [#allocation3 + $0x1], 1 }
 0x1bb   :  { %635 = vsyncpa [#allocation5], 1 }

// kernel: ggcn_layer_sp.3
= control target key start
LH: loop header
LB: loop body
LE: loop exit
PB: predicated region body
PF: predicated region fallthrough
CT: control target
= control target key end

     0   :  { %s3249_s0 = inlined_call_operand.vmem [shape: f32[5], index: 0, kind: input, shape index: {}]   ;;  %s3250_s1 = inlined_call_operand.vmem [shape: f32[256,32], index: 1, kind: input, shape index: {}, may-alias: {1,3}]   ;;  %s3251_s2 = inlined_call_operand.vmem [shape: f32[256,1], index: 2, kind: input, shape index: {}, may-alias: {2,4}]   ;;  %s3252_s3 = inlined_call_operand.vmem [shape: f32[256,32], index: 3, kind: input, shape index: {}, may-alias: {1,3}]   ;;  %s3253_s4 = inlined_call_operand.vmem [shape: f32[256,1], index: 4, kind: input, shape index: {}, may-alias: {2,4}]   ;;  %s3254_s5 = inlined_call_operand.vmem [shape: f32[256,256], index: 5, kind: input, shape index: {}]   ;;  %s3255_s6 = inlined_call_operand.hbm [shape: f32[256,256], index: 6, kind: input, shape index: {}]   ;;  %s3256_s7 = inlined_call_operand.vmem [shape: f32[256,32], index: 7, kind: output, shape index: {}]  }
   0x1   :  { %3261 = sst [smem:[#allocation14_spill]] %s3249_s0 }
   0x2   :  { %3262 = sst [smem:[#allocation15_spill]] %s3254_s5 }
   0x3   :  { %12 = vsyncpa [#allocation5], 0 }
   0x4   :  { %13 = vsyncpa [#allocation4], 0 }
   0x5   :  { %15 = vsyncpa [#allocation4 + $0x1], 0  ;;  %s2387_s24 = smov 0   ;;  %s2389_s25 = smov 0  }
   0x6   :  { %s2391_s26 = smov 0   ;;  %s2393_s27 = smov 0  }
   0x7   :  { %s2395_s28 = smov 0   ;;  %s2397_s29 = smov 0  }
   0x8   :  { %s2399_s30 = smov 0   ;;  %s2401_s8 = smov 0  }
   0x9 LB: > { %3263 = sst [smem:[#allocation10_spill]] %s2335_s30  ;;  %s1834_s9 = sadd.s32 4294967295, %s2339_s8   ;;  %s2339_s8 = sphi %s2401_s8, %s21_s8   ;;  %s2335_s30 = sphi %s2399_s30, %s3309_s30   ;;  %s2331_s29 = sphi %s2397_s29, %s3314_s29   ;;  %s2327_s28 = sphi %s2395_s28, %s3307_s28   ;;  %s2323_s27 = sphi %s2393_s27, %s3313_s27   ;;  %s2319_s26 = sphi %s2391_s26, %s3312_s26   ;;  %s2315_s25 = sphi %s2389_s25, %s3311_s25   ;;  %s2311_s24 = sphi %s2387_s24, %s3310_s24  }
   0xa   : > { %s30_s10 = sadd.s32 1, %s2331_s29  ;;  %s33_s11 = sadd.s32 1, %s2335_s30 }
   0xb   : > { %p31_p0 = scmp.ge.s32.totalorder %s30_s10, 2  ;;  %s167_s12 = sadd.s32 1, %s2319_s26 }
   0xc   : > { %p174_p1 = scmp.ne.s32.totalorder %s2319_s26, %s2315_s25  ;;  %p175_p2 = scmp.eq.s32.totalorder %s2339_s8, 0 }
   0xd   : > { %s3316_s10 = smov (%p31_p0, %s30_s10), 0  ;;  %s3318_s11 = smov (!%p31_p0, %s33_s11), %s2335_s30 }
   0xe   : > { %3264 = sst [smem:[#allocation11_spill]] %s3316_s10  ;;  %s163_s13 = ssub.s32 %s2331_s29, %s3316_s10 }
   0xf   : > { %p35_p3 = scmp.ge.s32.totalorder %s3318_s11, 2  ;;  %p208_p4 = scmp.ne.s32.totalorder %s2315_s25, %s2311_s24 }
  0x10   : > { %p2438_p5 = por %p175_p2, %p174_p1  ;;  %p2442_p6 = scmp.eq.s32.totalorder %s1834_s9, 0 }
  0x11   : > { %s3320_s11 = smov (%p35_p3, %s3318_s11), 0  ;;  %p1836_p8 = scmp.ge.s32.totalorder %s2339_s8, 1 }
  0x12   : > { %3267 = sst [smem:[#allocation12_spill]] %s3320_s11  ;;  %p2450_p7 = por %p2442_p6, %p208_p4 }
  0x13   : > { %s162_s17 = ssub.s32 %s2335_s30, %s3320_s11  ;;  %p245_p9 = scmp.lt.s32.totalorder %s2339_s8, 5 }
  0x14   : > { %s3268_s16 = scalar_select %p2450_p7, 1, 0 }
  0x15   : > { %s164_s18 = sor.u32 %s163_s13, %s162_s17  ;;  %p2458_p11 = pnand %p1836_p8, %p245_p9 }
  0x16   : > { %p165_p10 = scmp.eq.s32.totalorder %s164_s18, 0  ;;  %s3270_s0 = sld [smem:[#allocation14_spill]] }
  0x17   : > { %p2087_p12 = pneg %p2458_p11 }
  0x18   : > { %s2466_s23 = scalar_select %p165_p10, %s2319_s26, %s167_s12  }
  0x19   : > { %p2088_p13 = pnand %p2087_p12, %p2442_p6 }
  0x1a   : > { %3271 = sst [smem:[#allocation13_spill]] %s2466_s23 }
  0x1b   : > { %p2230_p1 = pneg %p2088_p13 }
  0x1c   : > { %s258_s22 = sshll.u32 %s3270_s0, 4  ;;  %s259_s22 = int_to_ptr.vmem [resolvable:$true] %s258_s22 }
  0x1d   : > { %s2228_s24 = scalar_lea.vmem %s259_s22, 16  ;;  %p2236_p4 = scmp.lt.s32.totalorder %s259_s22, %s259_s22 }
  0x1e   : > { %p2229_p0 = scmp.ne.s32.totalorder %s259_s22, %s2228_s24  ;;  %p2237_p8 = scmp.lt.s32.totalorder %s2228_s24, %s2228_s24 }
  0x20   : > { %p2231_p2 = pnand %p2230_p1, %p2229_p0  ;;  %p2238_p9 = por %p2237_p8, %p2236_p4 }
  0x22   : > { %p2232_p3 = pneg %p2231_p2 }
  0x24   : > { %p2239_p7 = pnand %p2238_p9, %p2232_p3 }
  0x26   : > { %2242 = shalt.err (!%p2239_p7)
}
  0x27   : > { %s2341_s9 = smov [#allocation3]   ;;  %p1838_p10 = scmp.ge.s32.totalorder %s2339_s8, 4 }
  0x28   : > { %2090 = dma.vmem_to_smem (!%p2088_p13), %s259_s22, 16, %s2341_s9, [#allocation5]  }
  0x29   : > { %265 = sbr.rel (%p1838_p10) target bundleno = 82 (0x52), region = 20 }
  0x2e   : > { %304 = sbr.rel (!%p2438_p5) target bundleno = 64 (0x40), region = 40  ;;  %s306_s12 = sand.u32 (%p2438_p5), 1, %s2319_s26  }
  0x2f   : > { %s1903_s13 = sshll.u32 (%p2438_p5), %s2335_s30, 5  ;;  %s1839_s17 = sshll.u32 (%p2438_p5), %s306_s12, 7 }
  0x30   : > { %s311_s18 = sadd.s32 (%p2438_p5), %s2331_s29, %s1903_s13  ;;  %s3272_s5 = sld [smem:[#allocation15_spill]] (%p2438_p5) }
  0x31   : > { %s1842_s20 = sshll.u32 (%p2438_p5), %s311_s18, 3  ;;  %s308_s22 = scalar_lea.vmem (%p2438_p5), [#allocation6], %s1839_s17 }
  0x36   : > { %s2481_s0 = scalar_lea.vmem %s3272_s5, %s1842_s20 }
  0x37   : > { %v372_v0 = vld [vmem:[%s2481_s0] sm:$0xff]  ;;  %v374_v1 = vld [vmem:[%s2481_s0 + $0x10] sm:$0xff] }
  0x38   : > { %v376_v2 = vld [vmem:[%s2481_s0 + $0x20] sm:$0xff]  ;;  %373 = vst [vmem:[%s308_s22] sm:$0xff] %v372_v0  ;;  %375 = vst [vmem:[%s308_s22 + $0x8] sm:$0xff] %v374_v1  ;;  %v378_v3 = vld [vmem:[%s2481_s0 + $0x30] sm:$0xff] }
  0x39   : > { %377 = vst [vmem:[%s308_s22 + $0x10] sm:$0xff] %v376_v2  ;;  %v380_v4 = vld [vmem:[%s2481_s0 + $0x40] sm:$0xff]  ;;  %v382_v5 = vld [vmem:[%s2481_s0 + $0x50] sm:$0xff]  ;;  %379 = vst [vmem:[%s308_s22 + $0x18] sm:$0xff] %v378_v3 }
  0x3a   : > { %381 = vst [vmem:[%s308_s22 + $0x20] sm:$0xff] %v380_v4  ;;  %383 = vst [vmem:[%s308_s22 + $0x28] sm:$0xff] %v382_v5  ;;  %v384_v6 = vld [vmem:[%s2481_s0 + $0x60] sm:$0xff]  ;;  %v386_v7 = vld [vmem:[%s2481_s0 + $0x70] sm:$0xff] }
  0x3b   : > { %v388_v8 = vld [vmem:[%s2481_s0 + $0x80] sm:$0xff]  ;;  %385 = vst [vmem:[%s308_s22 + $0x30] sm:$0xff] %v384_v6  ;;  %387 = vst [vmem:[%s308_s22 + $0x38] sm:$0xff] %v386_v7  ;;  %v390_v9 = vld [vmem:[%s2481_s0 + $0x90] sm:$0xff] }
  0x3c   : > { %389 = vst [vmem:[%s308_s22 + $0x40] sm:$0xff] %v388_v8  ;;  %v392_v10 = vld [vmem:[%s2481_s0 + $0xa0] sm:$0xff]  ;;  %v394_v11 = vld [vmem:[%s2481_s0 + $0xb0] sm:$0xff]  ;;  %391 = vst [vmem:[%s308_s22 + $0x48] sm:$0xff] %v390_v9 }
  0x3d   : > { %393 = vst [vmem:[%s308_s22 + $0x50] sm:$0xff] %v392_v10  ;;  %395 = vst [vmem:[%s308_s22 + $0x58] sm:$0xff] %v394_v11  ;;  %v396_v12 = vld [vmem:[%s2481_s0 + $0xc0] sm:$0xff]  ;;  %v398_v13 = vld [vmem:[%s2481_s0 + $0xd0] sm:$0xff] }
  0x3e   : > { %v400_v14 = vld [vmem:[%s2481_s0 + $0xe0] sm:$0xff]  ;;  %397 = vst [vmem:[%s308_s22 + $0x60] sm:$0xff] %v396_v12  ;;  %399 = vst [vmem:[%s308_s22 + $0x68] sm:$0xff] %v398_v13  ;;  %v402_v15 = vld [vmem:[%s2481_s0 + $0xf0] sm:$0xff] }
  0x3f   : > { %401 = vst [vmem:[%s308_s22 + $0x70] sm:$0xff] %v400_v14  ;;  %403 = vst [vmem:[%s308_s22 + $0x78] sm:$0xff] %v402_v15 }
  0x40 PF: > { %s410_s9 = sand.u32 1, %s2319_s26   ;;  %s1904_s12 = sshll.u32 %s2335_s30, 5 }
  0x41   : > { %s1843_s13 = sshll.u32 %s410_s9, 7  ;;  %s420_s17 = sadd.s32 %s2331_s29, %s1904_s12 }
  0x42   : > { %s1846_s18 = sshll.u32 %s420_s17, 7  ;;  %s414_s20 = scalar_lea.vmem [#allocation7], %s1843_s13 }
  0x43   : > { %s423_s21 = sshll.u32 %s414_s20, 4  ;;  %s422_s11 = scalar_lea.hbm %s3255_s6, %s1846_s18  ;;  %s424_s21 = int_to_ptr.vmem [resolvable:$true] %s423_s21 }
  0x44   : > { %s411_s10 = scalar_lea.sflag [#allocation4], %s410_s9  ;;  %s2255_s0 = scalar_lea.vmem %s424_s21, 2048 }
  0x45   : > { %p2256_p7 = scmp.ne.s32.totalorder %s424_s21, %s2255_s0  ;;  %s2342_s22 = smov [#allocation7]  }
  0x46   : > { %s2259_s23 = sshll.u32 %s2342_s22, 4  ;;  %s2260_s23 = int_to_ptr.vmem [resolvable:$false] %s2259_s23 }
  0x47   : > { %p2257_p12 = pnand %p2256_p7, %p2438_p5  ;;  %s2261_s30 = scalar_lea.vmem %s2260_s23, 4096 }
  0x48   : > { %p2262_p0 = scmp.lt.s32.totalorder %s424_s21, %s2260_s23  ;;  %p2263_p1 = scmp.lt.s32.totalorder %s2261_s30, %s2255_s0 }
  0x49   : > { %p2258_p13 = pneg %p2257_p12 }
  0x4a   : > { %p2264_p2 = por %p2263_p1, %p2262_p0 }
  0x4c   : > { %p2265_p3 = pnand %p2264_p2, %p2258_p13 }
  0x4e   : > { %2268 = shalt.err (!%p2265_p3)
}
  0x4f   : > { %s2343_s12 = smov 256   ;;  %s2344_s5 = smov 128  }
  0x50   : > { %s2345_s13 = smov 8  }
  0x51   : > { %2083 = dma.hbm_to_vmem [thread:$0]  (%p2438_p5), %s422_s11, 2048, %s424_s21, %s411_s10, %s2343_s12, %s2344_s5, %s2345_s13  }
  0x52 PF: > { %435 = sbr.rel (%p2458_p11) target bundleno = 749 (0x2ed), region = 82 }
  0x57   : > { %2302 = dma.done.wait (%p2442_p6), [#allocation5], 16  }
  0x58   : > { %2304 = vsyncadd (%p2442_p6), [#allocation5], 4294967280  ;;  %s442_s30 = sand.u32 1, %s2315_s25   ;;  %p3273_p5 = scmp.ne.s32.totalorder %s3268_s16, 0 }
  0x59   : > { %s1849_s23 = sshll.u32 %s442_s30, 7  ;;  %s449_s17 = scalar_lea.sflag [#allocation4], %s442_s30 }
  0x5a   : > { %s2516_s9 = scalar_lea.vmem [#allocation6], %s1849_s23  ;;  %s2518_s18 = scalar_lea.vmem [#allocation7], %s1849_s23 }
  0x5b   : > { %2306 = dma.done.wait (%p3273_p5), %s449_s17, 2048  }
  0x5c   : > { %2308 = vsyncadd (%p3273_p5), %s449_s17, 4294965248 }
  0x5d   : > { %457 = sfence }
  0x5e   : > { %s1851_s10 = sshll.u32 %s2327_s28, 4  ;;  %s1855_s11 = sshll.u32 %s2323_s27, 4 }
  0x5f   : > { %p509_p6 = scmp.lt.s32.totalorder %s1851_s10, 31  ;;  %p521_p11 = scmp.lt.s32.totalorder %s1855_s11, 31 }
  0x60   : > { %p1861_p4 = scmp.ne.s32.totalorder %s2323_s27, 0 }
  0x61   : > { %s3322_s10 = smov (!%p509_p6, %s1851_s10), 31  ;;  %s3324_s11 = smov (!%p521_p11, %s1855_s11), 31 }
  0x62   : > { %s1852_s14 = sshll.u32 %s3322_s10, 3  ;;  %s1856_s16 = sshll.u32 %s3324_s11, 3 }
  0x63   : > { %s512_s20 = scalar_lea.vmem %s3250_s1, %s1852_s14  ;;  %s2532_s0 = scalar_lea.vmem %s3251_s2, %s1852_s14 }
  0x64   : > { %s2537_s5 = scalar_lea.vmem %s3256_s7, %s1852_s14  ;;  %v2539_v16 = vld [vmem:[%s512_s20] sm:$0xff]  ;;  %v2541_v17 = vld [vmem:[%s512_s20 + $0x8] sm:$0xff]  ;;  %v2543_v18 = vld [vmem:[%s512_s20 + $0x10] sm:$0xff]  ;;  %s2548_s23 = scalar_lea.vmem %s3253_s4, %s1856_s16 }
  0x65   : > { %v2550_v19 = vld [vmem:[%s512_s20 + $0x18] sm:$0xff]  ;;  %v2552_v20 = vld [vmem:[%s512_s20 + $0x20] sm:$0xff]  ;;  %v2554_v21 = vld [vmem:[%s512_s20 + $0x28] sm:$0xff]  ;;  %s524_s11 = scalar_lea.vmem %s3252_s3, %s1856_s16  ;;  %s1862_s14 = sld [smem:[#allocation3 + $0x2]] (!%p1861_p4) }
  0x66   : > { %v2559_v22 = vld [vmem:[%s512_s20 + $0x30] sm:$0xff]  ;;  %v2561_v23 = vld [vmem:[%s512_s20 + $0x38] sm:$0xff]  ;;  %v2563_v24 = vld [vmem:[%s512_s20 + $0x40] sm:$0xff] }
  0x67   : > { %v2565_v25 = vld [vmem:[%s512_s20 + $0x48] sm:$0xff]  ;;  %v2567_v26 = vld [vmem:[%s512_s20 + $0x50] sm:$0xff]  ;;  %v2569_v27 = vld [vmem:[%s512_s20 + $0x58] sm:$0xff] }
  0x68   : > { %v2571_v28 = vld [vmem:[%s512_s20 + $0x60] sm:$0xff]  ;;  %v2573_v29 = vld [vmem:[%s512_s20 + $0x68] sm:$0xff]  ;;  %v2575_v30 = vld [vmem:[%s512_s20 + $0x70] sm:$0xff] }
  0x69   : > { %v2577_v31 = vld [vmem:[%s512_s20 + $0x78] sm:$0xff]  ;;  %v2579_v32 = vld [vmem:[%s524_s11] sm:$0xff]  ;;  %v2581_v33 = vld [vmem:[%s524_s11 + $0x8] sm:$0xff] }
  0x6a   : > { %v2583_v34 = vld [vmem:[%s524_s11 + $0x10] sm:$0xff]  ;;  %v2585_v35 = vld [vmem:[%s524_s11 + $0x18] sm:$0xff]  ;;  %v2587_v36 = vld [vmem:[%s524_s11 + $0x20] sm:$0xff]  ;;  %575 = sbr.rel (%p1861_p4) target bundleno = 122 (0x7a), region = 98 }
  0x6b   : > { %v2589_v37 = vld [vmem:[%s524_s11 + $0x28] sm:$0xff]  ;;  %v2591_v38 = vld [vmem:[%s524_s11 + $0x30] sm:$0xff]  ;;  %v2593_v39 = vld [vmem:[%s524_s11 + $0x38] sm:$0xff] }
  0x6c   : > { %v2595_v40 = vld [vmem:[%s524_s11 + $0x40] sm:$0xff]  ;;  %v2597_v41 = vld [vmem:[%s524_s11 + $0x48] sm:$0xff]  ;;  %v2599_v42 = vld [vmem:[%s524_s11 + $0x50] sm:$0xff] }
  0x6d   : > { %v2601_v43 = vld [vmem:[%s524_s11 + $0x58] sm:$0xff]  ;;  %v2603_v44 = vld [vmem:[%s524_s11 + $0x60] sm:$0xff]  ;;  %v2605_v45 = vld [vmem:[%s524_s11 + $0x68] sm:$0xff] }
  0x6e   : > { %v2607_v46 = vld [vmem:[%s524_s11 + $0x70] sm:$0xff]  ;;  %v2609_v47 = vld [vmem:[%s524_s11 + $0x78] sm:$0xff] }
  0x6f   : > { %v577_v48 = vstv %s1862_s14  ;;  %vm594_vm0 = vcmask 261120  }
  0x70   : > { %v578_v49 = vmul.f32 %v577_v48, %v2539_v16  ;;  %v579_v50 = vmul.f32 %v577_v48, %v2541_v17  ;;  %v580_v51 = vmul.f32 %v577_v48, %v2543_v18  ;;  %v581_v52 = vmul.f32 %v577_v48, %v2550_v19 }
  0x71   : > { %v582_v53 = vmul.f32 %v577_v48, %v2552_v20  ;;  %v583_v54 = vmul.f32 %v577_v48, %v2554_v21  ;;  %v584_v55 = vmul.f32 %v577_v48, %v2559_v22  ;;  %v585_v56 = vmul.f32 %v577_v48, %v2561_v23 }
  0x72   : > { %595 = vst.msk [vmem:[#allocation2] sm:$0xff] %vm594_vm0, %v578_v49  ;;  %596 = vst.msk [vmem:[#allocation2 + $0x8] sm:$0xff] %vm594_vm0, %v579_v50  ;;  %v586_v57 = vmul.f32 %v577_v48, %v2563_v24  ;;  %v587_v58 = vmul.f32 %v577_v48, %v2565_v25  ;;  %v588_v59 = vmul.f32 %v577_v48, %v2567_v26 }
  0x73   : > { %597 = vst.msk [vmem:[#allocation2 + $0x10] sm:$0xff] %vm594_vm0, %v580_v51  ;;  %598 = vst.msk [vmem:[#allocation2 + $0x18] sm:$0xff] %vm594_vm0, %v581_v52  ;;  %v589_v60 = vmul.f32 %v577_v48, %v2569_v27  ;;  %v590_v61 = vmul.f32 %v577_v48, %v2571_v28  ;;  %v591_v62 = vmul.f32 %v577_v48, %v2573_v29 }
  0x74   : > { %599 = vst.msk [vmem:[#allocation2 + $0x20] sm:$0xff] %vm594_vm0, %v582_v53  ;;  %600 = vst.msk [vmem:[#allocation2 + $0x28] sm:$0xff] %vm594_vm0, %v583_v54  ;;  %v592_v63 = vmul.f32 %v577_v48, %v2575_v30  ;;  %v593_v0 = vmul.f32 %v577_v48, %v2577_v31 }
  0x75   : > { %601 = vst.msk [vmem:[#allocation2 + $0x30] sm:$0xff] %vm594_vm0, %v584_v55  ;;  %602 = vst.msk [vmem:[#allocation2 + $0x38] sm:$0xff] %vm594_vm0, %v585_v56 }
  0x76   : > { %603 = vst.msk [vmem:[#allocation2 + $0x40] sm:$0xff] %vm594_vm0, %v586_v57  ;;  %604 = vst.msk [vmem:[#allocation2 + $0x48] sm:$0xff] %vm594_vm0, %v587_v58 }
  0x77   : > { %605 = vst.msk [vmem:[#allocation2 + $0x50] sm:$0xff] %vm594_vm0, %v588_v59  ;;  %606 = vst.msk [vmem:[#allocation2 + $0x58] sm:$0xff] %vm594_vm0, %v589_v60 }
  0x78   : > { %607 = vst.msk [vmem:[#allocation2 + $0x60] sm:$0xff] %vm594_vm0, %v590_v61  ;;  %608 = vst.msk [vmem:[#allocation2 + $0x68] sm:$0xff] %vm594_vm0, %v591_v62 }
  0x79   : > { %609 = vst.msk [vmem:[#allocation2 + $0x70] sm:$0xff] %vm594_vm0, %v592_v63  ;;  %610 = vst.msk [vmem:[#allocation2 + $0x78] sm:$0xff] %vm594_vm0, %v593_v0 }
  0x7a PF: > { %v736_v1 = vld [vmem:[%s2548_s23 + $0x68] sm:$0xff]  ;;  %v738_v2 = vld [vmem:[%s2548_s23 + $0x78] sm:$0xff]  ;;  %2025 = vmatprep.subr.mxu1 %v2609_v47  ;;  %v2346_v3 = vmov 0   ;;  %v735_v4 = vld [vmem:[%s2548_s23 + $0x60] sm:$0xff]  ;;  %vm835_vm1 = vcmask 261120   ;;  %s1897_s15 = sld [smem:[#allocation3 + $0x3]] }
  0x7b   : > { %2163 = vset.pattern.permute.xlu1 %v2346_v3  ;;  %2162 = vset.pattern.permute.xlu0 %v2346_v3  ;;  %v737_v5 = vld [vmem:[%s2548_s23 + $0x70] sm:$0xff]  ;;  %v734_v7 = vld [vmem:[%s2548_s23 + $0x58] sm:$0xff]  ;;  %v731_v8 = vld [vmem:[%s2548_s23 + $0x40] sm:$0xff]  ;;  %s1898_s19 = sld [smem:[#allocation3 + $0x4]]  ;;  %s1896_s20 = sshll.u32 %s2327_s28, 7 }
  0x7c   : > { %806 = vperm.xlu1 %2163, %v736_v1   ;;  %816 = vperm.xlu0 %2162, %v738_v2   ;;  %v733_v6 = vld [vmem:[%s2548_s23 + $0x50] sm:$0xff]  ;;  %v732_v9 = vld [vmem:[%s2548_s23 + $0x48] sm:$0xff]  ;;  %v730_v11 = vld [vmem:[%s2548_s23 + $0x38] sm:$0xff]  ;;  %s2903_s28 = sld [smem:[#allocation3]]  ;;  %p1900_p8 = scmp.ne.s32.totalorder %s2323_s27, 1 }
  0x7d   : > { %2026 = vmatpush3.msra.mxu1 %v2609_v47  ;;  %v729_v10 = vld [vmem:[%s2548_s23 + $0x30] sm:$0xff]  ;;  %v727_v12 = vld [vmem:[%s2548_s23 + $0x20] sm:$0xff]  ;;  %v728_v13 = vld [vmem:[%s2548_s23 + $0x28] sm:$0xff]  ;;  %s2912_s24 = sld [smem:[#allocation3 + $0x1]] }
  0x7e   : > { %2027 = vmatprep.subr.mxu1 %v2607_v46  ;;  %v725_v14 = vld [vmem:[%s2548_s23 + $0x10] sm:$0xff]  ;;  %v726_v15 = vld [vmem:[%s2548_s23 + $0x18] sm:$0xff]  ;;  %v723_v48 = vld [vmem:[%s2548_s23] sm:$0xff] }
  0x7f   : > { %2028 = vmatpush3.msra.mxu1 %v2607_v46  ;;  %v724_v49 = vld [vmem:[%s2548_s23 + $0x8] sm:$0xff]  ;;  %v611_v51 = vld [vmem:[%s2532_s0] sm:$0xff]  ;;  %v614_v52 = vld [vmem:[%s2532_s0 + $0x18] sm:$0xff] }
  0x80   : > { %801 = vperm.xlu1 %2163, %v735_v4   ;;  %811 = vperm.xlu0 %2162, %v737_v5   ;;  %v612_v50 = vld [vmem:[%s2532_s0 + $0x8] sm:$0xff]  ;;  %v613_v53 = vld [vmem:[%s2532_s0 + $0x10] sm:$0xff]  ;;  %v615_v55 = vld [vmem:[%s2532_s0 + $0x20] sm:$0xff] }
  0x81   : > { %2029 = vmatprep.subr.mxu1 %v2605_v45  ;;  %v616_v54 = vld [vmem:[%s2532_s0 + $0x28] sm:$0xff]  ;;  %v618_v56 = vld [vmem:[%s2532_s0 + $0x38] sm:$0xff]  ;;  %v617_v57 = vld [vmem:[%s2532_s0 + $0x30] sm:$0xff] }
  0x82   : > { %2030 = vmatpush3.msra.mxu1 %v2605_v45  ;;  %v620_v58 = vld [vmem:[%s2532_s0 + $0x48] sm:$0xff]  ;;  %v619_v59 = vld [vmem:[%s2532_s0 + $0x40] sm:$0xff]  ;;  %v622_v60 = vld [vmem:[%s2532_s0 + $0x58] sm:$0xff] }
  0x83   : > { %2031 = vmatprep.subr.mxu1 %v2603_v44  ;;  %v621_v61 = vld [vmem:[%s2532_s0 + $0x50] sm:$0xff]  ;;  %v624_v62 = vld [vmem:[%s2532_s0 + $0x68] sm:$0xff]  ;;  %v623_v63 = vld [vmem:[%s2532_s0 + $0x60] sm:$0xff] }
  0x84   : > { %791 = vperm.xlu1 %2163, %v733_v6   ;;  %796 = vperm.xlu0 %2162, %v734_v7   ;;  %v626_v0 = vld [vmem:[%s2532_s0 + $0x78] sm:$0xff]  ;;  %v625_v1 = vld [vmem:[%s2532_s0 + $0x70] sm:$0xff] }
  0x85   : > { %2032 = vmatpush3.msra.mxu1 %v2603_v44 }
  0x86   : > { %2033 = vmatprep.subr.mxu1 %v2601_v43 }
  0x87   : > { %2034 = vmatpush3.msra.mxu1 %v2601_v43 }
  0x88   : > { %781 = vperm.xlu1 %2163, %v731_v8   ;;  %786 = vperm.xlu0 %2162, %v732_v9  }
  0x89   : > { %2035 = vmatprep.subr.mxu1 %v2599_v42 }
  0x8a   : > { %2036 = vmatpush3.msra.mxu1 %v2599_v42 }
  0x8b   : > { %2037 = vmatprep.subr.mxu1 %v2597_v41 }
  0x8c   : > { %771 = vperm.xlu1 %2163, %v729_v10   ;;  %776 = vperm.xlu0 %2162, %v730_v11  }
  0x8d   : > { %2038 = vmatpush3.msra.mxu1 %v2597_v41 }
  0x8e   : > { %2039 = vmatprep.subr.mxu1 %v2595_v40 }
  0x8f   : > { %2040 = vmatpush3.msra.mxu1 %v2595_v40 }
  0x90   : > { %761 = vperm.xlu1 %2163, %v727_v12   ;;  %766 = vperm.xlu0 %2162, %v728_v13  }
  0x91   : > { %2041 = vmatprep.subr.mxu1 %v2593_v39 }
  0x92   : > { %2042 = vmatpush3.msra.mxu1 %v2593_v39 }
  0x93   : > { %2043 = vmatprep.subr.mxu1 %v2591_v38 }
  0x94   : > { %751 = vperm.xlu1 %2163, %v725_v14   ;;  %756 = vperm.xlu0 %2162, %v726_v15  }
  0x95   : > { %2044 = vmatpush3.msra.mxu1 %v2591_v38 }
  0x96   : > { %2045 = vmatprep.subr.mxu1 %v2589_v37 }
  0x97   : > { %2046 = vmatpush3.msra.mxu1 %v2589_v37 }
  0x98   : > { %741 = vperm.xlu1 %2163, %v723_v48   ;;  %746 = vperm.xlu0 %2162, %v724_v49  }
  0x99   : > { %2047 = vmatprep.subr.mxu1 %v2587_v36 }
  0x9a   : > { %2048 = vmatpush3.msra.mxu1 %v2587_v36 }
  0x9b   : > { %2049 = vmatprep.subr.mxu1 %v2585_v35 }
  0x9c   : > { %634 = vperm.xlu1 %2163, %v612_v50   ;;  %629 = vperm.xlu0 %2162, %v611_v51  }
  0x9d   : > { %2050 = vmatpush3.msra.mxu1 %v2585_v35 }
  0x9e   : > { %2051 = vmatprep.subr.mxu1 %v2583_v34 }
  0x9f   : > { %2052 = vmatpush3.msra.mxu1 %v2583_v34 }
  0xa0   : > { %644 = vperm.xlu1 %2163, %v614_v52   ;;  %639 = vperm.xlu0 %2162, %v613_v53  }
  0xa1   : > { %2053 = vmatprep.subr.mxu1 %v2581_v33 }
  0xa2   : > { %2054 = vmatpush3.msra.mxu1 %v2581_v33 }
  0xa3   : > { %2055 = vmatprep.subr.mxu1 %v2579_v32 }
  0xa4   : > { %654 = vperm.xlu1 %2163, %v616_v54   ;;  %649 = vperm.xlu0 %2162, %v615_v55  }
  0xa5   : > { %2056 = vmatpush3.msra.mxu1 %v2579_v32 }
  0xa8   : > { %664 = vperm.xlu1 %2163, %v618_v56   ;;  %659 = vperm.xlu0 %2162, %v617_v57  }
  0xac   : > { %674 = vperm.xlu1 %2163, %v620_v58   ;;  %669 = vperm.xlu0 %2162, %v619_v59  }
  0xb0   : > { %684 = vperm.xlu1 %2163, %v622_v60   ;;  %679 = vperm.xlu0 %2162, %v621_v61  }
  0xb4   : > { %694 = vperm.xlu1 %2163, %v624_v62   ;;  %689 = vperm.xlu0 %2162, %v623_v63  }
  0xb8   : > { %704 = vperm.xlu1 %2163, %v626_v0   ;;  %699 = vperm.xlu0 %2162, %v625_v1  }
  0xf7   : > { %v807_v2 = vpop.permute.xlu1 %806  ;;  %v817_v3 = vpop.permute.xlu0 %816 }
  0xf8   : > { %v834_v4 = vmul.f32 %v817_v3, %v2609_v47  ;;  %v832_v6 = vmul.f32 %v807_v2, %v2605_v45 }
  0xfa   : > { %1969 = vmatprep.subr.msk.mxu0 %vm835_vm1, %v834_v4 }
  0xfb   : > { %1970 = vmatpush3.xpose.msk.msra.mxu0 %vm835_vm1, %v834_v4  ;;  %v812_v5 = vpop.permute.xlu0 %811  ;;  %v802_v8 = vpop.permute.xlu1 %801 }
  0xfc   : > { %v833_v7 = vmul.f32 %v812_v5, %v2607_v46  ;;  %v831_v10 = vmul.f32 %v802_v8, %v2603_v44 }
  0xfe   : > { %1971 = vmatprep.subr.msk.mxu0 %vm835_vm1, %v833_v7 }
  0xff   : > { %1972 = vmatpush3.xpose.msk.msra.mxu0 %vm835_vm1, %v833_v7  ;;  %v797_v9 = vpop.permute.xlu0 %796  ;;  %v792_v47 = vpop.permute.xlu1 %791  ;;  %v1165_v7 = vld [vmem:[%s2518_s18] sm:$0xff] }
 0x100   : > { %1973 = vmatprep.subr.msk.mxu0 %vm835_vm1, %v832_v6  ;;  %v830_v45 = vmul.f32 %v797_v9, %v2601_v43  ;;  %v829_v13 = vmul.f32 %v792_v47, %v2599_v42  ;;  %v2795_v9 = vstv %s1898_s19 }
 0x103   : > { %1974 = vmatpush3.xpose.msk.msra.mxu0 %vm835_vm1, %v832_v6  ;;  %v787_v11 = vpop.permute.xlu0 %786  ;;  %v782_v12 = vpop.permute.xlu1 %781  ;;  %v2789_v6 = vstv %s1897_s15 }
 0x104   : > { %1975 = vmatprep.subr.msk.mxu0 %vm835_vm1, %v831_v10  ;;  %v828_v44 = vmul.f32 %v787_v11, %v2597_v41  ;;  %v827_v43 = vmul.f32 %v782_v12, %v2595_v40 }
 0x107   : > { %1976 = vmatpush3.xpose.msk.msra.mxu0 %vm835_vm1, %v831_v10  ;;  %v777_v46 = vpop.permute.xlu0 %776  ;;  %v772_v15 = vpop.permute.xlu1 %771  ;;  %v1182_v10 = vmul.f32 %v2789_v6, %v1165_v7 }
 0x108   : > { %1977 = vmatprep.subr.msk.mxu0 %vm835_vm1, %v830_v45  ;;  %v826_v50 = vmul.f32 %v777_v46, %v2593_v39  ;;  %v825_v52 = vmul.f32 %v772_v15, %v2591_v38 }
 0x109   : > { %v2805_v46 = vadd.f32 %v2795_v9, %v1182_v10 }
 0x10b   : > { %1978 = vmatpush3.xpose.msk.msra.mxu0 %vm835_vm1, %v830_v45  ;;  %v767_v14 = vpop.permute.xlu0 %766  ;;  %v762_v42 = vpop.permute.xlu1 %761  ;;  %v1170_v45 = vld [vmem:[%s2518_s18 + $0x28] sm:$0xff]  ;;  %v1232_v15 = vand.u32 2147483647, %v2805_v46 }
 0x10c   : > { %1979 = vmatprep.subr.msk.mxu0 %vm835_vm1, %v829_v13  ;;  %v824_v53 = vmul.f32 %v767_v14, %v2589_v37  ;;  %v1187_v14 = vmul.f32 %v2789_v6, %v1170_v45 }
 0x10f   : > { %1980 = vmatpush3.xpose.msk.msra.mxu0 %vm835_vm1, %v829_v13  ;;  %v757_v48 = vpop.permute.xlu0 %756  ;;  %v752_v40 = vpop.permute.xlu1 %751 }
 0x110   : > { %1981 = vmatprep.subr.msk.mxu0 %vm835_vm1, %v828_v44  ;;  %v822_v38 = vmul.f32 %v757_v48, %v2585_v35  ;;  %v821_v37 = vmul.f32 %v752_v40, %v2583_v34  ;;  %v1169_v48 = vld [vmem:[%s2518_s18 + $0x20] sm:$0xff]  ;;  %v1174_v40 = vld [vmem:[%s2518_s18 + $0x48] sm:$0xff] }
 0x113   : > { %1982 = vmatpush3.xpose.msk.msra.mxu0 %vm835_vm1, %v828_v44  ;;  %v747_v49 = vpop.permute.xlu0 %746  ;;  %v742_v39 = vpop.permute.xlu1 %741 }
 0x114   : > { %1983 = vmatprep.subr.msk.mxu0 %vm835_vm1, %v827_v43  ;;  %v819_v35 = vmul.f32 %v742_v39, %v2579_v32 }
 0x117   : > { %1984 = vmatpush3.xpose.msk.msra.mxu0 %vm835_vm1, %v827_v43  ;;  %v630_v51 = vpop.permute.xlu0 %629  ;;  %v635_v54 = vpop.permute.xlu1 %634 }
 0x118   : > { %v707_v41 = vmul.f32 %v630_v51, %v2539_v16  ;;  %1985 = vmatprep.subr.msk.mxu0 %vm835_vm1, %v826_v50  ;;  %v823_v16 = vmul.f32 %v762_v42, %v2587_v36  ;;  %v820_v36 = vmul.f32 %v747_v49, %v2581_v33  ;;  %v708_v59 = vmul.f32 %v635_v54, %v2541_v17  ;;  %v1172_v49 = vld [vmem:[%s2518_s18 + $0x38] sm:$0xff]  ;;  %v1171_v51 = vld [vmem:[%s2518_s18 + $0x30] sm:$0xff] }
 0x119   : > { %v1189_v39 = vmul.f32 %v2789_v6, %v1172_v49 }
 0x11a   : > { %2001 = vmatprep.mubr.msk.f32.mxu0 %vm835_vm1, %v707_v41 }
 0x11b   : > { %1986 = vmatpush3.xpose.msk.msra.mxu0 %vm835_vm1, %v826_v50  ;;  %v640_v55 = vpop.permute.xlu0 %639  ;;  %v645_v56 = vpop.permute.xlu1 %644  ;;  %v2821_v50 = vadd.f32 %v2795_v9, %v1187_v14 }
 0x11c   : > { %1987 = vmatprep.subr.msk.mxu0 %vm835_vm1, %v825_v52  ;;  %v709_v60 = vmul.f32 %v640_v55, %v2543_v18  ;;  %v710_v61 = vmul.f32 %v645_v56, %v2550_v19  ;;  %v1191_v55 = vmul.f32 %v2789_v6, %v1174_v40 }
 0x11f   : > { %1988 = vmatpush3.xpose.msk.msra.mxu0 %vm835_vm1, %v825_v52  ;;  %v650_v57 = vpop.permute.xlu0 %649  ;;  %v655_v58 = vpop.permute.xlu1 %654  ;;  %v1186_v52 = vmul.f32 %v2789_v6, %v1169_v48 }
 0x120   : > { %1989 = vmatprep.subr.msk.mxu0 %vm835_vm1, %v824_v53  ;;  %v711_v62 = vmul.f32 %v650_v57, %v2552_v20  ;;  %v712_v0 = vmul.f32 %v655_v58, %v2554_v21 }
 0x123   : > { %1990 = vmatpush3.xpose.msk.msra.mxu0 %vm835_vm1, %v824_v53  ;;  %v660_v34 = vpop.permute.xlu0 %659  ;;  %v665_v33 = vpop.permute.xlu1 %664  ;;  %v1248_v53 = vsub.f32 0.0, %v1232_v15 }
 0x124   : > { %1991 = vmatprep.subr.msk.mxu0 %vm835_vm1, %v823_v16  ;;  %v713_v17 = vmul.f32 %v660_v34, %v2559_v22  ;;  %v714_v1 = vmul.f32 %v665_v33, %v2561_v23  ;;  %v2840_v33 = vadd.f32 %v2795_v9, %v1191_v55 }
 0x125   : > { %v1264_v57 = vmul.f32 1.442695, %v1248_v53 }
 0x127   : > { %1992 = vmatpush3.xpose.msk.msra.mxu0 %vm835_vm1, %v823_v16  ;;  %v670_v32 = vpop.permute.xlu0 %669  ;;  %v675_v63 = vpop.permute.xlu1 %674 }
 0x128   : > { %1993 = vmatprep.subr.msk.mxu0 %vm835_vm1, %v822_v38  ;;  %v715_v19 = vmul.f32 %v670_v32, %v2563_v24  ;;  %v716_v20 = vmul.f32 %v675_v63, %v2565_v25 }
 0x12b   : > { %1994 = vmatpush3.xpose.msk.msra.mxu0 %vm835_vm1, %v822_v38  ;;  %v680_v18 = vpop.permute.xlu0 %679  ;;  %v685_v2 = vpop.permute.xlu1 %684  ;;  %v1188_v38 = vmul.f32 %v2789_v6, %v1171_v51 }
 0x12c   : > { %1995 = vmatprep.subr.msk.mxu0 %vm835_vm1, %v821_v37  ;;  %v717_v21 = vmul.f32 %v680_v18, %v2567_v26  ;;  %v718_v23 = vmul.f32 %v685_v2, %v2569_v27 }
 0x12d   : > { %v2837_v34 = vadd.f32 %v2795_v9, %v1188_v38 }
 0x12f   : > { %1996 = vmatpush3.xpose.msk.msra.mxu0 %vm835_vm1, %v821_v37  ;;  %v690_v3 = vpop.permute.xlu0 %689  ;;  %v695_v22 = vpop.permute.xlu1 %694  ;;  %v1237_v37 = vand.u32 2147483647, %v2821_v50 }
 0x130   : > { %1997 = vmatprep.subr.msk.mxu0 %vm835_vm1, %v820_v36  ;;  %v719_v24 = vmul.f32 %v690_v3, %v2571_v28  ;;  %v720_v25 = vmul.f32 %v695_v22, %v2573_v29  ;;  %v1166_v28 = vld [vmem:[%s2518_s18 + $0x8] sm:$0xff]  ;;  %v1168_v29 = vld [vmem:[%s2518_s18 + $0x18] sm:$0xff] }
 0x131   : > { %v1183_v8 = vmul.f32 %v2789_v6, %v1166_v28 }
 0x133   : > { %1998 = vmatpush3.xpose.msk.msra.mxu0 %vm835_vm1, %v820_v36  ;;  %v700_v4 = vpop.permute.xlu0 %699  ;;  %v705_v26 = vpop.permute.xlu1 %704  ;;  %v2801_v11 = vadd.f32 %v2795_v9, %v1183_v8  ;;  %v2831_v36 = vadd.f32 %v2795_v9, %v1186_v52  ;;  %v1177_v8 = vld [vmem:[%s2518_s18 + $0x60] sm:$0xff]  ;;  %v1179_v52 = vld [vmem:[%s2518_s18 + $0x70] sm:$0xff] }
 0x134   : > { %1999 = vmatprep.subr.msk.mxu0 %vm835_vm1, %v819_v35  ;;  %v721_v5 = vmul.f32 %v700_v4, %v2575_v30  ;;  %v722_v27 = vmul.f32 %v705_v26, %v2577_v31  ;;  %v1167_v30 = vld [vmem:[%s2518_s18 + $0x10] sm:$0xff]  ;;  %v1185_v31 = vmul.f32 %v2789_v6, %v1168_v29  ;;  %v1194_v48 = vmul.f32 %v2789_v6, %v1177_v8 }
 0x135   : > { %v1184_v47 = vmul.f32 %v2789_v6, %v1167_v30  ;;  %v1233_v44 = vand.u32 2147483647, %v2801_v11  ;;  %v1196_v55 = vmul.f32 %v2789_v6, %v1179_v52  ;;  %v1216_v52 = vmax.f32 %v2805_v46, 0.0 }
 0x136   : > { %v2808_v12 = vadd.f32 %v2795_v9, %v1185_v31 }
 0x137   : > { %2000 = vmatpush3.xpose.msk.msra.mxu0 %vm835_vm1, %v819_v35  ;;  %v2811_v13 = vadd.f32 %v2795_v9, %v1184_v47  ;;  %v1249_v41 = vsub.f32 0.0, %v1233_v44  ;;  %v2834_v35 = vadd.f32 %v2795_v9, %v1189_v39 }
 0x138   : > { %v1235_v43 = vand.u32 2147483647, %v2808_v12 }
 0x139   : > { %v1234_v42 = vand.u32 2147483647, %v2811_v13  ;;  %v1266_v56 = vmul.f32 1.442695, %v1249_v41  ;;  %v1239_v32 = vand.u32 2147483647, %v2834_v35 }
 0x13a   : > { %2002 = vmatmul.mubr.msk.f32.vlgmr.msra.gmra.mxu0 %vm835_vm1, %v708_v59  ;;  %v1251_v16 = vsub.f32 0.0, %v1235_v43  ;;  %v1180_v43 = vld [vmem:[%s2518_s18 + $0x78] sm:$0xff] }
 0x13b   : > { %2004 = vmatprep.mubr.msk.f32.mxu0 %vm835_vm1, %v709_v60  ;;  %v1250_v54 = vsub.f32 0.0, %v1234_v42  ;;  %v1253_v60 = vsub.f32 0.0, %v1237_v37  ;;  %2164 = vpow2.f32 %v1266_v56  ;;  %v1197_v39 = vmul.f32 %v2789_v6, %v1180_v43 }
 0x13c   : > { %v1270_v58 = vmul.f32 1.442695, %v1251_v16  ;;  %2166 = vpow2.f32 %v1264_v57  ;;  %v1077_v37 = vlaneseq  ;;  %v1217_v43 = vmax.f32 %v2801_v11, 0.0 }
 0x13d   : > { %v1268_v59 = vmul.f32 1.442695, %v1250_v54  ;;  %v1274_v63 = vmul.f32 1.442695, %v1253_v60  ;;  %v2876_v54 = vadd.f32 %v2795_v9, %v1194_v48  ;;  %v2880_v60 = vadd.f32 %v2795_v9, %v1197_v39  ;;  %v1132_v39 = vld [vmem:[%s2516_s9] sm:$0xff] }
 0x13e   : > { %2005 = vmatmul.mubr.msk.f32.gmra.mxu0 %vm835_vm1, %v710_v61  ;;  %v1236_v61 = vand.u32 2147483647, %v2831_v36  ;;  %2168 = vpow2.f32 %v1270_v58 }
 0x13f   : > { %2007 = vmatprep.mubr.msk.f32.mxu0 %vm835_vm1, %v711_v62  ;;  %v1238_v62 = vand.u32 2147483647, %v2837_v34  ;;  %2170 = vpow2.f32 %v1268_v59 }
 0x140   : > { %v1252_v18 = vsub.f32 0.0, %v1236_v61  ;;  %2172 = vpow2.f32 %v1274_v63  ;;  %v2883_v63 = vshrl.u32 %v1077_v37, 7 }
 0x141   : > { %v1254_v2 = vsub.f32 0.0, %v1238_v62 }
 0x142   : > { %2008 = vmatmul.mubr.msk.f32.gmra.mxu0 %vm835_vm1, %v712_v0  ;;  %v1241_v0 = vand.u32 2147483647, %v2840_v33  ;;  %v1272_v22 = vmul.f32 1.442695, %v1252_v18  ;;  %v1080_v8 = vadd.s32 16, %v2883_v63 }
 0x143   : > { %2010 = vmatprep.mubr.msk.f32.mxu0 %vm835_vm1, %v713_v17  ;;  %v1173_v17 = vld [vmem:[%s2518_s18 + $0x40] sm:$0xff] }
 0x144   : > { %v1257_v3 = vsub.f32 0.0, %v1241_v0  ;;  %2174 = vpow2.f32 %v1272_v22  ;;  %v2886_v0 = vadd.f32 %v2795_v9, %v1196_v55  ;;  %v2892_v22 = vand.u32 127, %v1077_v37 }
 0x146   : > { %2011 = vmatmul.mubr.msk.f32.gmra.mxu0 %vm835_vm1, %v714_v1  ;;  %v1255_v1 = vsub.f32 0.0, %v1239_v32  ;;  %v1244_v32 = vand.u32 2147483647, %v2876_v54 }
 0x147   : > { %2013 = vmatprep.mubr.msk.f32.mxu0 %vm835_vm1, %v715_v19  ;;  %v1176_v19 = vld [vmem:[%s2518_s18 + $0x58] sm:$0xff] }
 0x148   : > { %v1278_v4 = vmul.f32 1.442695, %v1255_v1  ;;  %v2165_v29 = vpop.eup %2164 }
 0x149   : > { %v2167_v30 = vpop.eup %2166  ;;  %v1297_v44 = vadd.f32 1.0, %v2165_v29 }
 0x14a   : > { %2014 = vmatmul.mubr.msk.f32.gmra.mxu0 %vm835_vm1, %v716_v20  ;;  %v1190_v20 = vmul.f32 %v2789_v6, %v1173_v17  ;;  %2176 = vpow2.f32 %v1278_v4  ;;  %v1296_v49 = vadd.f32 1.0, %v2167_v30 }
 0x14b   : > { %2016 = vmatprep.mubr.msk.f32.mxu0 %vm835_vm1, %v717_v21  ;;  %v1175_v21 = vld [vmem:[%s2518_s18 + $0x50] sm:$0xff]  ;;  %v2169_v47 = vpop.eup %2168 }
 0x14c   : > { %v2853_v26 = vadd.f32 %v2795_v9, %v1190_v20  ;;  %v2171_v14 = vpop.eup %2170  ;;  %v1299_v42 = vadd.f32 1.0, %v2169_v47 }
 0x14d   : > { %v1298_v40 = vadd.f32 1.0, %v2171_v14  ;;  %v2173_v16 = vpop.eup %2172  ;;  %v1096_v14 = vsub.s32 %v2883_v63, %v2892_v22 }
 0x14e   : > { %2017 = vmatmul.mubr.msk.f32.gmra.mxu0 %vm835_vm1, %v718_v23  ;;  %v1193_v23 = vmul.f32 %v2789_v6, %v1176_v19  ;;  %v1240_v10 = vand.u32 2147483647, %v2853_v26  ;;  %v1301_v58 = vadd.f32 1.0, %v2173_v16  ;;  %v1247_v19 = vand.u32 2147483647, %v2880_v60 }
 0x14f   : > { %2019 = vmatprep.mubr.msk.f32.mxu0 %vm835_vm1, %v719_v24  ;;  %v1178_v24 = vld [vmem:[%s2518_s18 + $0x68] sm:$0xff]  ;;  %s1895_s18 = sshll.u32 %s2323_s27, 7 }
 0x150   : > { %v1195_v28 = vmul.f32 %v2789_v6, %v1178_v24  ;;  %v2858_v7 = vadd.f32 %v2795_v9, %v1193_v23  ;;  %v1256_v51 = vsub.f32 0.0, %v1240_v10  ;;  %v1246_v23 = vand.u32 2147483647, %v2886_v0  ;;  %s1114_s21 = ssub.s32 %s1895_s18, %s1896_s20 }
 0x151   : > { %v2175_v62 = vpop.eup %2174  ;;  %v2898_v47 = vstv %s1114_s21 }
 0x152   : > { %2020 = vmatmul.mubr.msk.f32.gmra.mxu0 %vm835_vm1, %v720_v25  ;;  %v1276_v25 = vmul.f32 1.442695, %v1254_v2  ;;  %v2866_v45 = vadd.f32 %v2795_v9, %v1195_v28  ;;  %v1243_v15 = vand.u32 2147483647, %v2858_v7  ;;  %v1280_v56 = vmul.f32 1.442695, %v1256_v51 }
 0x153   : > { %2022 = vmatprep.mubr.msk.f32.mxu0 %vm835_vm1, %v721_v5  ;;  %v1192_v5 = vmul.f32 %v2789_v6, %v1175_v21  ;;  %v1300_v20 = vadd.f32 1.0, %v2175_v62  ;;  %v1079_v21 = vadd.s32 8, %v2883_v63  ;;  %v1262_v30 = vsub.f32 0.0, %v1246_v23 }
 0x154   : > { %2178 = vpow2.f32 %v1276_v25  ;;  %v1245_v53 = vand.u32 2147483647, %v2866_v45  ;;  %v1259_v38 = vsub.f32 0.0, %v1243_v15  ;;  %v1263_v25 = vsub.f32 0.0, %v1247_v19 }
 0x155   : > { %v2863_v31 = vadd.f32 %v2795_v9, %v1192_v5  ;;  %v1081_v5 = vadd.s32 24, %v2883_v63  ;;  %v1097_v29 = vsub.s32 %v1079_v21, %v2892_v22  ;;  %v1292_v11 = vmul.f32 1.442695, %v1262_v30 }
 0x156   : > { %2023 = vmatmul.mubr.msk.f32.gmra.mxu0 %vm835_vm1, %v722_v27  ;;  %v1282_v27 = vmul.f32 1.442695, %v1257_v3  ;;  %v1261_v59 = vsub.f32 0.0, %v1245_v53  ;;  %v1286_v61 = vmul.f32 1.442695, %v1259_v38  ;;  %v1260_v3 = vsub.f32 0.0, %v1244_v32 }
 0x157   : > { %v1242_v41 = vand.u32 2147483647, %v2863_v31  ;;  %v2177_v6 = vpop.eup %2176  ;;  %v1294_v15 = vmul.f32 1.442695, %v1263_v25  ;;  %vm2907_vm2 = vcmp.ne.s32.totalorder %v1097_v29, %v2898_v47  ;;  %vm2917_vm3 = vcmp.ne.s32.totalorder %v1096_v14, %v2898_v47 }
 0x158   : > { %2180 = vpow2.f32 %v1282_v27  ;;  %v1290_v1 = vmul.f32 1.442695, %v1261_v59  ;;  %v1303_v9 = vadd.f32 1.0, %v2177_v6  ;;  %v1288_v27 = vmul.f32 1.442695, %v1260_v3  ;;  %v1136_v59 = vld [vmem:[%s2516_s9 + $0x20] sm:$0xff] }
 0x159   : > { %2182 = vlog2.f32 %v1297_v44  ;;  %v1258_v57 = vsub.f32 0.0, %v1242_v41  ;;  %v1133_v41 = vld [vmem:[%s2516_s9 + $0x8] sm:$0xff]  ;;  %v1219_v38 = vmax.f32 %v2808_v12, 0.0  ;;  %v1083_v32 = vadd.s32 40, %v2883_v63 }
 0x15a   : > { %2184 = vlog2.f32 %v1296_v49  ;;  %v1149_v12 = vsel %vm2907_vm2, %v1133_v41, 0.0  ;;  %v1148_v6 = vsel %vm2917_vm3, %v1132_v39, 0.0  ;;  %v2953_v29 = vstv %s2903_s28 }
 0x15b   : > { %2186 = vlog2.f32 %v1299_v42  ;;  %v1284_v17 = vmul.f32 1.442695, %v1258_v57  ;;  %v1099_v42 = vsub.s32 %v1081_v5, %v2892_v22  ;;  %v1101_v5 = vsub.s32 %v1083_v32, %v2892_v22 }
 0x15c   : > { %2188 = vlog2.f32 %v1298_v40  ;;  %v1098_v40 = vsub.s32 %v1080_v8, %v2892_v22  ;;  %v2956_v8 = vstv %s2912_s24  ;;  %v1220_v51 = vmax.f32 %v2831_v36, 0.0 }
 0x15d   : > { %2190 = vpow2.f32 %v1280_v56  ;;  %v1218_v56 = vmax.f32 %v2811_v13, 0.0  ;;  %vm2925_vm4 = vcmp.ne.s32.totalorder %v1099_v42, %v2898_v47  ;;  %vm2969_vm6 = vcmp.ne.s32.totalorder %v1101_v5, %v2898_v47 }
 0x15e   : > { %2192 = vlog2.f32 %v1301_v58  ;;  %vm2936_vm5 = vcmp.ne.s32.totalorder %v1098_v40, %v2898_v47  ;;  %v1223_v36 = vmax.f32 %v2834_v35, 0.0  ;;  %v1225_v32 = vmax.f32 %v2840_v33, 0.0 }
 0x15f   : > { %2194 = vpow2.f32 %v1286_v61  ;;  %v1135_v61 = vld [vmem:[%s2516_s9 + $0x18] sm:$0xff]  ;;  %v1089_v13 = vadd.s32 88, %v2883_v63 }
 0x160   : > { %2196 = vpow2.f32 %v1284_v17  ;;  %v1134_v17 = vld [vmem:[%s2516_s9 + $0x10] sm:$0xff]  ;;  %v1151_v3 = vsel %vm2925_vm4, %v1135_v61, 0.0 }
 0x161   : > { %v2179_v18 = vpop.eup %2178  ;;  %2198 = vpow2.f32 %v1290_v1  ;;  %v1150_v25 = vsel %vm2936_vm5, %v1134_v17, 0.0 }
 0x162   : > { %v1302_v24 = vadd.f32 1.0, %v2179_v18  ;;  %2200 = vlog2.f32 %v1300_v20  ;;  %v1082_v18 = vadd.s32 32, %v2883_v63 }
 0x163   : > { %2202 = vlog2.f32 %v1303_v9  ;;  %v1221_v9 = vmax.f32 %v2821_v50, 0.0  ;;  %v1087_v50 = vadd.s32 72, %v2883_v63 }
 0x164   : > { %2204 = vlog2.f32 %v1302_v24  ;;  %v1100_v30 = vsub.s32 %v1082_v18, %v2892_v22 }
 0x165   : > { %v2181_v2 = vpop.eup %2180 }
 0x166   : > { %v1305_v4 = vadd.f32 1.0, %v2181_v2  ;;  %v2183_v28 = vpop.eup %2182  ;;  %v1085_v2 = vadd.s32 56, %v2883_v63  ;;  %vm2975_vm7 = vcmp.ne.s32.totalorder %v1100_v30, %v2898_v47  ;;  %v1107_v30 = vsub.s32 %v1089_v13, %v2892_v22 }
 0x167   : > { %v2185_v10 = vpop.eup %2184  ;;  %v1315_v49 = vmul.f32 0.6931472, %v2183_v28 }
 0x168   : > { %v2187_v44 = vpop.eup %2186  ;;  %2206 = vlog2.f32 %v1305_v4  ;;  %v1313_v16 = vmul.f32 0.6931472, %v2185_v10  ;;  %vm3041_vm13 = vcmp.ne.s32.totalorder %v1107_v30, %v2898_v47  ;;  %v3101_v30 = vld [vmem:[%s2516_s9 + $0x60] sm:$0xff] }
 0x169   : > { %v2189_v48 = vpop.eup %2188  ;;  %2208 = vpow2.f32 %v1288_v27  ;;  %v1319_v37 = vmul.f32 0.6931472, %v2187_v44  ;;  %v1345_v46 = vadd.f32 %v1315_v49, %v1217_v43  ;;  %v1084_v27 = vadd.s32 48, %v2883_v63 }
 0x16a   : > { %v2191_v55 = vpop.eup %2190  ;;  %v1317_v57 = vmul.f32 0.6931472, %v2189_v48  ;;  %2210 = vpow2.f32 %v1294_v15  ;;  %v1344_v1 = vadd.f32 %v1313_v16, %v1216_v52  ;;  %v1103_v15 = vsub.s32 %v1085_v2, %v2892_v22 }
 0x16b   : > { %v2193_v58 = vpop.eup %2192  ;;  %v1347_v19 = vadd.f32 %v1319_v37, %v1219_v38  ;;  %2212 = vpow2.f32 %v1292_v11  ;;  %v2946_v4 = vmul.f32 %v1345_v46, %v1149_v12  ;;  %v1304_v48 = vadd.f32 1.0, %v2191_v55 }
 0x16c   : > { %v2195_v62 = vpop.eup %2194  ;;  %v1346_v21 = vadd.f32 %v1317_v57, %v1218_v56  ;;  %v1323_v23 = vmul.f32 0.6931472, %v2193_v58  ;;  %v2960_v14 = vmul.f32 %v1344_v1, %v1148_v6  ;;  %v1102_v53 = vsub.s32 %v1084_v27, %v2892_v22  ;;  %v1137_v56 = vld [vmem:[%s2516_s9 + $0x28] sm:$0xff]  ;;  %v1138_v6 = vld [vmem:[%s2516_s9 + $0x30] sm:$0xff] }
 0x16d   : > { %v2197_v20 = vpop.eup %2196  ;;  %v2962_v44 = vmul.f32 %v1347_v19, %v1151_v3  ;;  %v1307_v41 = vadd.f32 1.0, %v2195_v62  ;;  %v1105_v55 = vsub.s32 %v1087_v50, %v2892_v22  ;;  %vm2983_vm8 = vcmp.ne.s32.totalorder %v1103_v15, %v2898_v47  ;;  %v1139_v62 = vld [vmem:[%s2516_s9 + $0x38] sm:$0xff]  ;;  %v1141_v1 = vld [vmem:[%s2516_s9 + $0x48] sm:$0xff] }
 0x16e   : > { %v2199_v24 = vpop.eup %2198  ;;  %v2965_v49 = vmul.f32 %v1346_v21, %v1150_v25  ;;  %v1349_v42 = vadd.f32 %v1323_v23, %v1221_v9  ;;  %v1306_v39 = vadd.f32 1.0, %v2197_v20  ;;  %v1222_v58 = vmax.f32 %v2837_v34, 0.0 }
 0x16f   : > { %v2201_v28 = vpop.eup %2200  ;;  %v1086_v46 = vadd.s32 64, %v2883_v63  ;;  %2214 = vlog2.f32 %v1304_v48  ;;  %vm2993_vm9 = vcmp.ne.s32.totalorder %v1102_v53, %v2898_v47  ;;  %v1309_v34 = vadd.f32 1.0, %v2199_v24 }
 0x170   : > { %v2203_v10 = vpop.eup %2202  ;;  %v1321_v11 = vmul.f32 0.6931472, %v2201_v28  ;;  %2216 = vlog2.f32 %v1307_v41  ;;  %v1153_v18 = vsel %vm2969_vm6, %v1137_v56, 0.0  ;;  %vm3002_vm10 = vcmp.ne.s32.totalorder %v1105_v55, %v2898_v47 }
 0x171   : > { %v2205_v43 = vpop.eup %2204  ;;  %v1327_v37 = vmul.f32 0.6931472, %v2203_v10  ;;  %2218 = vlog2.f32 %v1306_v39  ;;  %v1088_v19 = vadd.s32 80, %v2883_v63  ;;  %v1152_v20 = vsel %vm2975_vm7, %v1136_v59, 0.0 }
 0x172   : > { %v1325_v61 = vmul.f32 0.6931472, %v2205_v43  ;;  %v1348_v3 = vadd.f32 %v1321_v11, %v1220_v51  ;;  %v1104_v9 = vsub.s32 %v1086_v46, %v2892_v22  ;;  %v1155_v24 = vsel %vm2983_vm8, %v1139_v62, 0.0 }
 0x173   : > { %v1351_v21 = vadd.f32 %v1327_v37, %v1223_v36  ;;  %v1154_v25 = vsel %vm2993_vm9, %v1138_v6, 0.0  ;;  %v1157_v28 = vsel %vm3002_vm10, %v1141_v1, 0.0  ;;  %v1091_v50 = vadd.s32 104, %v2883_v63  ;;  %v3046_v36 = vld [vmem:[%s2516_s9 + $0x58] sm:$0xff] }
 0x174   : > { %v1350_v5 = vadd.f32 %v1325_v61, %v1222_v58  ;;  %2220 = vlog2.f32 %v1309_v34  ;;  %v3019_v10 = vmul.f32 %v1349_v42, %v1153_v18  ;;  %v1106_v15 = vsub.s32 %v1088_v19, %v2892_v22  ;;  %v3063_v61 = vld [vmem:[%s2516_s9 + $0x50] sm:$0xff] }
 0x175   : > { %v2207_v52 = vpop.eup %2206  ;;  %v3022_v43 = vmul.f32 %v1348_v3, %v1152_v20  ;;  %v3024_v51 = vmul.f32 %v1351_v21, %v1155_v24  ;;  %vm3027_vm11 = vcmp.ne.s32.totalorder %v1104_v9, %v2898_v47  ;;  %v1224_v39 = vmax.f32 %v2853_v26, 0.0 }
 0x176   : > { %v2209_v16 = vpop.eup %2208  ;;  %v1331_v35 = vmul.f32 0.6931472, %v2207_v52  ;;  %v3032_v52 = vld [vmem:[%s2516_s9 + $0x40] sm:$0xff]  ;;  %v3034_v42 = vmul.f32 %v1350_v5, %v1154_v25  ;;  %v1109_v37 = vsub.s32 %v1091_v50, %v2892_v22  ;;  %v1090_v55 = vadd.s32 96, %v2883_v63 }
 0x177   : > { %v2211_v17 = vpop.eup %2210  ;;  %v1308_v2 = vadd.f32 1.0, %v2209_v16  ;;  %v1227_v16 = vmax.f32 %v2858_v7, 0.0  ;;  %v1156_v26 = vsel %vm3027_vm11, %v3032_v52, 0.0  ;;  %vm3055_vm14 = vcmp.ne.s32.totalorder %v1106_v15, %v2898_v47 }
 0x178   : > { %v2213_v23 = vpop.eup %2212  ;;  %v1353_v27 = vadd.f32 %v1331_v35, %v1225_v32  ;;  %v1311_v48 = vadd.f32 1.0, %v2211_v17  ;;  %v1159_v62 = vsel %vm3041_vm13, %v3046_v36, 0.0  ;;  %v1226_v12 = vmax.f32 %v2863_v31, 0.0  ;;  %v3078_v17 = vld [vmem:[%s2516_s9 + $0x68] sm:$0xff] }
 0x179   : > { %2222 = vlog2.f32 %v1308_v2  ;;  %v1310_v40 = vadd.f32 1.0, %v2213_v23  ;;  %v1229_v6 = vmax.f32 %v2866_v45, 0.0  ;;  %vm3073_vm2 = vcmp.ne.s32.totalorder %v1109_v37, %v2898_v47 }
 0x17a   : > { %v3036_v53 = vmul.f32 %v1353_v27, %v1157_v28  ;;  %2224 = vlog2.f32 %v1311_v48  ;;  %v1108_v18 = vsub.s32 %v1090_v55, %v2892_v22  ;;  %v1158_v31 = vsel %vm3055_vm14, %v3063_v61, 0.0 }
 0x17b   : > { %2226 = vlog2.f32 %v1310_v40  ;;  %v1228_v20 = vmax.f32 %v2876_v54, 0.0  ;;  %v1161_v25 = vsel %vm3073_vm2, %v3078_v17, 0.0  ;;  %v1093_v5 = vadd.s32 120, %v2883_v63 }
 0x17c   : > { %vm3096_vm5 = vcmp.ne.s32.totalorder %v1108_v18, %v2898_v47  ;;  %v1092_v37 = vadd.s32 112, %v2883_v63  ;;  %v1230_v41 = vmax.f32 %v2886_v0, 0.0 }
 0x17d   : > { %v1160_v63 = vsel %vm3096_vm5, %v3101_v30, 0.0  ;;  %v1111_v61 = vsub.s32 %v1093_v5, %v2892_v22 }
 0x17e   : > { %v1110_v18 = vsub.s32 %v1092_v37, %v2892_v22 }
 0x17f   : > { %vm3133_vm9 = vcmp.ne.s32.totalorder %v1111_v61, %v2898_v47 }
 0x180   : > { %vm3155_vm13 = vcmp.ne.s32.totalorder %v1110_v18, %v2898_v47  ;;  %v1444_v18 = vld [vmem:[#allocation2] sm:$0xff] }
 0x1fa   : > { %v2003_v11 = vpop.f32.mrf.mxu0 }
 0x1fb   : > { %vm1361_vm12 = vcmp.gt.f32.partialorder %v2003_v11, 0.0  ;;  %v1413_v56 = vmul.f32 %v2003_v11, %v2946_v4  ;;  %v2215_v4 = vpop.eup %2214  ;;  %v1231_v11 = vmax.f32 %v2880_v60, 0.0 }
 0x1fc   : > { %v998_v57 = vpop.f32.mrf.mxu0  ;;  %v1381_v46 = vsel %vm1361_vm12, %v2953_v29, %v2956_v8  ;;  %v2217_v13 = vpop.eup %2216  ;;  %v1329_v9 = vmul.f32 0.6931472, %v2215_v4 }
 0x1fd   : > { %vm1360_vm15 = vcmp.gt.f32.partialorder %v998_v57, 0.0  ;;  %v1412_v59 = vmul.f32 %v2960_v14, %v998_v57  ;;  %v2219_v33 = vpop.eup %2218  ;;  %v1429_v1 = vmul.f32 %v1413_v56, %v1381_v46  ;;  %v1335_v24 = vmul.f32 0.6931472, %v2217_v13 }
 0x1fe   : > { %v2006_v32 = vpop.f32.mrf.mxu0  ;;  %v1380_v35 = vsel %vm1360_vm15, %v2953_v29, %v2956_v8  ;;  %v1333_v28 = vmul.f32 0.6931472, %v2219_v33  ;;  %v2221_v50 = vpop.eup %2220  ;;  %v1352_v58 = vadd.f32 %v1329_v9, %v1224_v39 }
 0x1ff   : > { %vm1363_vm0 = vcmp.gt.f32.partialorder %v2006_v32, 0.0  ;;  %v1428_v34 = vmul.f32 %v1412_v59, %v1380_v35  ;;  %v1415_v19 = vmul.f32 %v2006_v32, %v2962_v44  ;;  %v2223_v55 = vpop.eup %2222 }
 0x200   : > { %v1008_v2 = vpop.f32.mrf.mxu0  ;;  %v1383_v3 = vsel %vm1363_vm0, %v2953_v29, %v2956_v8  ;;  %v1354_v32 = vadd.f32 %v1333_v28, %v1226_v12  ;;  %v2225_v33 = vpop.eup %2224  ;;  %v1404_v12 = vmul.f32 %v1352_v58, %v1156_v26 }
 0x201   : > { %vm1362_vm3 = vcmp.gt.f32.partialorder %v1008_v2, 0.0  ;;  %v1414_v21 = vmul.f32 %v2965_v49, %v1008_v2  ;;  %2057 = vmatprep.mubr.f32.mxu1 %v1428_v34  ;;  %v1431_v15 = vmul.f32 %v1415_v19, %v1383_v3  ;;  %v1337_v34 = vmul.f32 0.6931472, %v2223_v55  ;;  %v1147_v3 = vld [vmem:[%s2516_s9 + $0x78] sm:$0xff] }
 0x202   : > { %v1382_v23 = vsel %vm1362_vm3, %v2953_v29, %v2956_v8  ;;  %v2009_v44 = vpop.f32.mrf.mxu0  ;;  %2058 = vmatmul.mubr.f32.vlgmr.msra.gmra.mxu1 %v1429_v1  ;;  %v2227_v1 = vpop.eup %2226  ;;  %v1406_v26 = vmul.f32 %v1354_v32, %v1158_v31 }
 0x203   : > { %v1430_v27 = vmul.f32 %v1414_v21, %v1382_v23  ;;  %vm1365_vm4 = vcmp.gt.f32.partialorder %v2009_v44, 0.0  ;;  %v1417_v48 = vmul.f32 %v2009_v44, %v3019_v10  ;;  %v1355_v10 = vadd.f32 %v1335_v24, %v1227_v16  ;;  %v1146_v24 = vld [vmem:[%s2516_s9 + $0x70] sm:$0xff] }
 0x204   : > { %v1018_v40 = vpop.f32.mrf.mxu0  ;;  %v1385_v56 = vsel %vm1365_vm4, %v2953_v29, %v2956_v8  ;;  %v1356_v36 = vadd.f32 %v1337_v34, %v1228_v20  ;;  %v1341_v31 = vmul.f32 0.6931472, %v2227_v1  ;;  %v1454_v20 = vld [vmem:[#allocation2 + $0x50] sm:$0xff] }
 0x205   : > { %vm1364_vm6 = vcmp.gt.f32.partialorder %v1018_v40, 0.0  ;;  %v1416_v57 = vmul.f32 %v3022_v43, %v1018_v40  ;;  %2060 = vmatprep.mubr.f32.mxu1 %v1430_v27  ;;  %v1339_v43 = vmul.f32 0.6931472, %v2221_v50  ;;  %v1433_v35 = vmul.f32 %v1417_v48, %v1385_v56 }
 0x206   : > { %v1384_v46 = vsel %vm1364_vm6, %v2953_v29, %v2956_v8  ;;  %v2012_v59 = vpop.f32.mrf.mxu0  ;;  %2061 = vmatmul.mubr.f32.gmra.mxu1 %v1431_v15  ;;  %v1407_v22 = vmul.f32 %v1355_v10, %v1159_v62  ;;  %v1343_v62 = vmul.f32 0.6931472, %v2225_v33  ;;  %v1408_v49 = vmul.f32 %v1356_v36, %v1160_v63 }
 0x207   : > { %v1432_v4 = vmul.f32 %v1416_v57, %v1384_v46  ;;  %vm1367_vm7 = vcmp.gt.f32.partialorder %v2012_v59, 0.0  ;;  %v1419_v39 = vmul.f32 %v2012_v59, %v3024_v51  ;;  %v1357_v2 = vadd.f32 %v1339_v43, %v1229_v6 }
 0x208   : > { %v1028_v13 = vpop.f32.mrf.mxu0  ;;  %v1387_v7 = vsel %vm1367_vm7, %v2953_v29, %v2956_v8  ;;  %v1359_v30 = vadd.f32 %v1343_v62, %v1231_v11  ;;  %v1358_v17 = vadd.f32 %v1341_v31, %v1230_v41  ;;  %v1162_v15 = vsel %vm3155_vm13, %v1146_v24, 0.0  ;;  %v1448_v41 = vld [vmem:[#allocation2 + $0x20] sm:$0xff]  ;;  %v1453_v62 = vld [vmem:[#allocation2 + $0x48] sm:$0xff] }
 0x209   : > { %vm1366_vm8 = vcmp.gt.f32.partialorder %v1028_v13, 0.0  ;;  %v1418_v16 = vmul.f32 %v3034_v42, %v1028_v13  ;;  %2063 = vmatprep.mubr.f32.mxu1 %v1432_v4  ;;  %v1435_v21 = vmul.f32 %v1419_v39, %v1387_v7  ;;  %v1409_v54 = vmul.f32 %v1357_v2, %v1161_v25  ;;  %v1445_v13 = vld [vmem:[#allocation2 + $0x8] sm:$0xff]  ;;  %v1451_v2 = vld [vmem:[#allocation2 + $0x38] sm:$0xff]  ;;  %v1452_v31 = vld [vmem:[#allocation2 + $0x40] sm:$0xff] }
 0x20a   : > { %v1386_v51 = vsel %vm1366_vm8, %v2953_v29, %v2956_v8  ;;  %v2015_v19 = vpop.f32.mrf.mxu0  ;;  %2064 = vmatmul.mubr.f32.gmra.mxu1 %v1433_v35  ;;  %v1410_v57 = vmul.f32 %v1358_v17, %v1162_v15  ;;  %v1459_v17 = vld [vmem:[#allocation2 + $0x78] sm:$0xff]  ;;  %v1458_v15 = vld [vmem:[#allocation2 + $0x70] sm:$0xff] }
 0x20b   : > { %v1434_v52 = vmul.f32 %v1418_v16, %v1386_v51  ;;  %vm1369_vm10 = vcmp.gt.f32.partialorder %v2015_v19, 0.0  ;;  %v1421_v38 = vmul.f32 %v2015_v19, %v3036_v53  ;;  %v1163_v53 = vsel %vm3133_vm9, %v1147_v3, 0.0  ;;  %v1447_v16 = vld [vmem:[#allocation2 + $0x18] sm:$0xff]  ;;  %v1446_v51 = vld [vmem:[#allocation2 + $0x10] sm:$0xff] }
 0x20c   : > { %v1038_v9 = vpop.f32.mrf.mxu0  ;;  %v1389_v23 = vsel %vm1369_vm10, %v2953_v29, %v2956_v8  ;;  %v1411_v37 = vmul.f32 %v1359_v30, %v1163_v53  ;;  %v1455_v53 = vld [vmem:[#allocation2 + $0x58] sm:$0xff]  ;;  %v1456_v30 = vld [vmem:[#allocation2 + $0x60] sm:$0xff] }
 0x20d   : > { %vm1368_vm11 = vcmp.gt.f32.partialorder %v1038_v9, 0.0  ;;  %v1420_v0 = vmul.f32 %v1404_v12, %v1038_v9  ;;  %2066 = vmatprep.mubr.f32.mxu1 %v1434_v52  ;;  %v1437_v5 = vmul.f32 %v1421_v38, %v1389_v23  ;;  %v1450_v38 = vld [vmem:[#allocation2 + $0x30] sm:$0xff] }
 0x20e   : > { %v1388_v45 = vsel %vm1368_vm11, %v2953_v29, %v2956_v8  ;;  %v2018_v6 = vpop.f32.mrf.mxu0  ;;  %2067 = vmatmul.mubr.f32.gmra.mxu1 %v1435_v21 }
 0x20f   : > { %v1436_v44 = vmul.f32 %v1420_v0, %v1388_v45  ;;  %vm1371_vm12 = vcmp.gt.f32.partialorder %v2018_v6, 0.0  ;;  %v1423_v27 = vmul.f32 %v2018_v6, %v1407_v22 }
 0x210   : > { %v1048_v28 = vpop.f32.mrf.mxu0  ;;  %v1391_v50 = vsel %vm1371_vm12, %v2953_v29, %v2956_v8 }
 0x211   : > { %vm1370_vm14 = vcmp.gt.f32.partialorder %v1048_v28, 0.0  ;;  %v1422_v14 = vmul.f32 %v1406_v26, %v1048_v28  ;;  %2069 = vmatprep.mubr.f32.mxu1 %v1436_v44  ;;  %v1439_v40 = vmul.f32 %v1423_v27, %v1391_v50  ;;  %v1457_v27 = vld [vmem:[#allocation2 + $0x68] sm:$0xff] }
 0x212   : > { %v1390_v47 = vsel %vm1370_vm14, %v2953_v29, %v2956_v8  ;;  %v2021_v25 = vpop.f32.mrf.mxu0  ;;  %2070 = vmatmul.mubr.f32.gmra.mxu1 %v1437_v5 }
 0x213   : > { %v1438_v48 = vmul.f32 %v1422_v14, %v1390_v47  ;;  %vm1373_vm15 = vcmp.gt.f32.partialorder %v2021_v25, 0.0  ;;  %v1425_v60 = vmul.f32 %v2021_v25, %v1409_v54 }
 0x214   : > { %v1058_v11 = vpop.f32.mrf.mxu0  ;;  %v1393_v55 = vsel %vm1373_vm15, %v2953_v29, %v2956_v8 }
 0x215   : > { %vm1372_vm0 = vcmp.gt.f32.partialorder %v1058_v11, 0.0  ;;  %v1424_v56 = vmul.f32 %v1408_v49, %v1058_v11  ;;  %2072 = vmatprep.mubr.f32.mxu1 %v1438_v48  ;;  %v1441_v10 = vmul.f32 %v1425_v60, %v1393_v55 }
 0x216   : > { %v1392_v58 = vsel %vm1372_vm0, %v2953_v29, %v2956_v8  ;;  %v2024_v46 = vpop.f32.mrf.mxu0  ;;  %2073 = vmatmul.mubr.f32.gmra.mxu1 %v1439_v40 }
 0x217   : > { %v1440_v59 = vmul.f32 %v1424_v56, %v1392_v58  ;;  %vm1375_vm2 = vcmp.gt.f32.partialorder %v2024_v46, 0.0  ;;  %v1427_v63 = vmul.f32 %v2024_v46, %v1411_v37 }
 0x218   : > { %v1068_v61 = vpop.f32.mrf.mxu0  ;;  %v1395_v4 = vsel %vm1375_vm2, %v2953_v29, %v2956_v8 }
 0x219   : > { %vm1374_vm3 = vcmp.gt.f32.partialorder %v1068_v61, 0.0  ;;  %v1426_v32 = vmul.f32 %v1410_v57, %v1068_v61  ;;  %2075 = vmatprep.mubr.f32.mxu1 %v1440_v59  ;;  %v1443_v39 = vmul.f32 %v1427_v63, %v1395_v4 }
 0x21a   : > { %v1394_v43 = vsel %vm1374_vm3, %v2953_v29, %v2956_v8  ;;  %2076 = vmatmul.mubr.f32.gmra.mxu1 %v1441_v10  ;;  %v1449_v8 = vld [vmem:[#allocation2 + $0x28] sm:$0xff] }
 0x21b   : > { %v1442_v35 = vmul.f32 %v1426_v32, %v1394_v43 }
 0x21d   : > { %2078 = vmatprep.mubr.f32.mxu1 %v1442_v35 }
 0x21e   : > { %2079 = vmatmul.mubr.f32.gmra.mxu1 %v1443_v39 }
 0x2c2   : > { %v2059_v34 = vpop.f32.mrf.mxu1 }
 0x2c3   : > { %v1606_v33 = vadd.f32 %v2059_v34, %v1445_v13 }
 0x2c4   : > { %v1526_v7 = vpop.f32.mrf.mxu1 }
 0x2c5   : > { %1622 = vst.msk [vmem:[#allocation2 + $0x8] sm:$0xff] %vm835_vm1, %v1606_v33  ;;  %v1605_v12 = vadd.f32 %v1526_v7, %v1444_v18 }
 0x2c6   : > { %v2062_v1 = vpop.f32.mrf.mxu1 }
 0x2c7   : > { %1621 = vst.msk [vmem:[#allocation2] sm:$0xff] %vm835_vm1, %v1605_v12  ;;  %v1608_v19 = vadd.f32 %v2062_v1, %v1447_v16 }
 0x2c8   : > { %v1536_v29 = vpop.f32.mrf.mxu1 }
 0x2c9   : > { %1624 = vst.msk [vmem:[#allocation2 + $0x18] sm:$0xff] %vm835_vm1, %v1608_v19  ;;  %v1607_v22 = vadd.f32 %v1536_v29, %v1446_v51 }
 0x2ca   : > { %v2065_v42 = vpop.f32.mrf.mxu1 }
 0x2cb   : > { %1623 = vst.msk [vmem:[#allocation2 + $0x10] sm:$0xff] %vm835_vm1, %v1607_v22  ;;  %v1610_v52 = vadd.f32 %v2065_v42, %v1449_v8 }
 0x2cc   : > { %v1546_v26 = vpop.f32.mrf.mxu1 }
 0x2cd   : > { %1626 = vst.msk [vmem:[#allocation2 + $0x28] sm:$0xff] %vm835_vm1, %v1610_v52  ;;  %v1609_v3 = vadd.f32 %v1546_v26, %v1448_v41 }
 0x2ce   : > { %v2068_v21 = vpop.f32.mrf.mxu1 }
 0x2cf   : > { %1625 = vst.msk [vmem:[#allocation2 + $0x20] sm:$0xff] %vm835_vm1, %v1609_v3  ;;  %v1612_v9 = vadd.f32 %v2068_v21, %v1451_v2 }
 0x2d0   : > { %v1556_v36 = vpop.f32.mrf.mxu1 }
 0x2d1   : > { %1628 = vst.msk [vmem:[#allocation2 + $0x38] sm:$0xff] %vm835_vm1, %v1612_v9  ;;  %v1611_v23 = vadd.f32 %v1556_v36, %v1450_v38 }
 0x2d2   : > { %v2071_v0 = vpop.f32.mrf.mxu1 }
 0x2d3   : > { %1627 = vst.msk [vmem:[#allocation2 + $0x30] sm:$0xff] %vm835_vm1, %v1611_v23  ;;  %v1614_v45 = vadd.f32 %v2071_v0, %v1453_v62 }
 0x2d4   : > { %v1566_v6 = vpop.f32.mrf.mxu1 }
 0x2d5   : > { %1630 = vst.msk [vmem:[#allocation2 + $0x48] sm:$0xff] %vm835_vm1, %v1614_v45  ;;  %v1613_v44 = vadd.f32 %v1566_v6, %v1452_v31 }
 0x2d6   : > { %v2074_v54 = vpop.f32.mrf.mxu1 }
 0x2d7   : > { %1629 = vst.msk [vmem:[#allocation2 + $0x40] sm:$0xff] %vm835_vm1, %v1613_v44  ;;  %v1616_v24 = vadd.f32 %v2074_v54, %v1455_v53 }
 0x2d8   : > { %v1576_v5 = vpop.f32.mrf.mxu1 }
 0x2d9   : > { %1632 = vst.msk [vmem:[#allocation2 + $0x58] sm:$0xff] %vm835_vm1, %v1616_v24  ;;  %v1615_v28 = vadd.f32 %v1576_v5, %v1454_v20 }
 0x2da   : > { %v2077_v49 = vpop.f32.mrf.mxu1 }
 0x2db   : > { %1631 = vst.msk [vmem:[#allocation2 + $0x50] sm:$0xff] %vm835_vm1, %v1615_v28  ;;  %v1618_v50 = vadd.f32 %v2077_v49, %v1457_v27 }
 0x2dc   : > { %v1586_v14 = vpop.f32.mrf.mxu1 }
 0x2dd   : > { %1634 = vst.msk [vmem:[#allocation2 + $0x68] sm:$0xff] %vm835_vm1, %v1618_v50  ;;  %v1617_v47 = vadd.f32 %v1586_v14, %v1456_v30 }
 0x2de   : > { %v2080_v25 = vpop.f32.mrf.mxu1 }
 0x2df   : > { %1633 = vst.msk [vmem:[#allocation2 + $0x60] sm:$0xff] %vm835_vm1, %v1617_v47  ;;  %v1620_v48 = vadd.f32 %v2080_v25, %v1459_v17  ;;  %1640 = sbr.rel (%p1900_p8) target bundleno = 749 (0x2ed), region = 102 }
 0x2e0   : > { %v1596_v40 = vpop.f32.mrf.mxu1 }
 0x2e1   : > { %1636 = vst.msk [vmem:[#allocation2 + $0x78] sm:$0xff] %vm835_vm1, %v1620_v48  ;;  %v1619_v60 = vadd.f32 %v1596_v40, %v1458_v15 }
 0x2e3   : > { %1635 = vst.msk [vmem:[#allocation2 + $0x70] sm:$0xff] %vm835_vm1, %v1619_v60 }
 0x2e4   : > { %v1641_v11 = vld [vmem:[#allocation2] sm:$0xff]  ;;  %v1642_v37 = vld [vmem:[#allocation2 + $0x8] sm:$0xff]  ;;  %v1643_v55 = vld [vmem:[#allocation2 + $0x10] sm:$0xff] }
 0x2e5   : > { %1657 = vst.msk [vmem:[%s2537_s5] sm:$0xff] %vm835_vm1, %v1641_v11  ;;  %1658 = vst.msk [vmem:[%s2537_s5 + $0x8] sm:$0xff] %vm835_vm1, %v1642_v37  ;;  %v1644_v56 = vld [vmem:[#allocation2 + $0x18] sm:$0xff]  ;;  %v1645_v57 = vld [vmem:[#allocation2 + $0x20] sm:$0xff] }
 0x2e6   : > { %1659 = vst.msk [vmem:[%s2537_s5 + $0x10] sm:$0xff] %vm835_vm1, %v1643_v55  ;;  %v1646_v58 = vld [vmem:[#allocation2 + $0x28] sm:$0xff]  ;;  %1660 = vst.msk [vmem:[%s2537_s5 + $0x18] sm:$0xff] %vm835_vm1, %v1644_v56  ;;  %v1647_v46 = vld [vmem:[#allocation2 + $0x30] sm:$0xff] }
 0x2e7   : > { %1661 = vst.msk [vmem:[%s2537_s5 + $0x20] sm:$0xff] %vm835_vm1, %v1645_v57  ;;  %1662 = vst.msk [vmem:[%s2537_s5 + $0x28] sm:$0xff] %vm835_vm1, %v1646_v58  ;;  %v1648_v59 = vld [vmem:[#allocation2 + $0x38] sm:$0xff]  ;;  %v1649_v10 = vld [vmem:[#allocation2 + $0x40] sm:$0xff] }
 0x2e8   : > { %1663 = vst.msk [vmem:[%s2537_s5 + $0x30] sm:$0xff] %vm835_vm1, %v1647_v46  ;;  %1664 = vst.msk [vmem:[%s2537_s5 + $0x38] sm:$0xff] %vm835_vm1, %v1648_v59  ;;  %v1650_v63 = vld [vmem:[#allocation2 + $0x48] sm:$0xff]  ;;  %v1651_v61 = vld [vmem:[#allocation2 + $0x50] sm:$0xff] }
 0x2e9   : > { %1665 = vst.msk [vmem:[%s2537_s5 + $0x40] sm:$0xff] %vm835_vm1, %v1649_v10  ;;  %v1652_v4 = vld [vmem:[#allocation2 + $0x58] sm:$0xff]  ;;  %1666 = vst.msk [vmem:[%s2537_s5 + $0x48] sm:$0xff] %vm835_vm1, %v1650_v63  ;;  %v1653_v32 = vld [vmem:[#allocation2 + $0x60] sm:$0xff] }
 0x2ea   : > { %1667 = vst.msk [vmem:[%s2537_s5 + $0x50] sm:$0xff] %vm835_vm1, %v1651_v61  ;;  %1668 = vst.msk [vmem:[%s2537_s5 + $0x58] sm:$0xff] %vm835_vm1, %v1652_v4  ;;  %v1654_v43 = vld [vmem:[#allocation2 + $0x68] sm:$0xff]  ;;  %v1655_v35 = vld [vmem:[#allocation2 + $0x70] sm:$0xff] }
 0x2eb   : > { %1669 = vst.msk [vmem:[%s2537_s5 + $0x60] sm:$0xff] %vm835_vm1, %v1653_v32  ;;  %1670 = vst.msk [vmem:[%s2537_s5 + $0x68] sm:$0xff] %vm835_vm1, %v1654_v43  ;;  %v1656_v39 = vld [vmem:[#allocation2 + $0x78] sm:$0xff] }
 0x2ec   : > { %1671 = vst.msk [vmem:[%s2537_s5 + $0x70] sm:$0xff] %vm835_vm1, %v1655_v35  ;;  %1672 = vst.msk [vmem:[%s2537_s5 + $0x78] sm:$0xff] %vm835_vm1, %v1656_v39 }
 0x2ed PF: > { %s21_s8 = sadd.s32 1, %s2339_s8   ;;  %s3306_s27 = sld [smem:[#allocation13_spill]] }
 0x2ee   : > { %p18_p9 = scmp.ge.s32.totalorder %s21_s8, 6   ;;  %s3307_s28 = sld [smem:[#allocation10_spill]] }
 0x2ef   : > { %s3308_s9 = sld [smem:[#allocation11_spill]]  ;;  %s3310_s24 = smov %s2315_s25 }
 0x2f0   : > { %s3309_s30 = sld [smem:[#allocation12_spill]]  ;;  %s3311_s25 = smov %s2319_s26 }
 0x2f1   :  { %20 = sbr.rel (!%p18_p9) target bundleno = 9 (0x9), region = 159 }
 0x2f3   : > { %s3312_s26 = smov %s3306_s27  ;;  %s3313_s27 = smov %s2331_s29 }
 0x2f5   : > { %s3314_s29 = smov %s3308_s9 }
 0x2f6   :  { %1695 = vsyncpa [#allocation4], 1 }
 0x2f7   :  { %1697 = vsyncpa [#allocation4 + $0x1], 1 }
 0x2f8   :  { %1698 = vsyncpa [#allocation5], 1 }
 0x2f9   :  { %1700 = vsyncpa [#allocation5 + $0x1], 1 }

</bundles_post_ra>
